<compile_context>
chip_gen: v7x
topology: tpu7x:2x2x1
jax: 0.10.0
libtpu: 0.0.40
codegen_flags: <defaults>
</compile_context>

<pallas_src>
import math
from functools import lru_cache, partial

import jax
import jax.numpy as jnp
from jax.experimental import pallas as pl
from jax.experimental.pallas import tpu as pltpu

_VMEM_LIMIT = 48 * 1024 * 1024  # > default scoped limit, < physical VMEM on every chip


# ---------------------------------------------------------------------------
# pl.Buffered(1) support probe (run once, eagerly, outside any jit trace).
# Constant operands don't need double buffering; single-buffering them halves
# their VMEM footprint.  Fall back to the default pipeline mode if unsupported.
# ---------------------------------------------------------------------------
@lru_cache(maxsize=1)
def _buffered1_ok():
    try:
        def k(x_ref, o_ref):
            o_ref[...] = x_ref[...] + 1.0

        x = jnp.zeros((8, 128), jnp.float32)
        out = pl.pallas_call(
            k,
            out_shape=jax.ShapeDtypeStruct((8, 128), jnp.float32),
            grid=(2,),
            in_specs=[pl.BlockSpec((8, 128), lambda i: (0, 0),
                                   pipeline_mode=pl.Buffered(1))],
            out_specs=pl.BlockSpec((8, 128), lambda i: (0, 0)),
        )(x)
        jax.block_until_ready(out)
        return True
    except Exception:
        return False


def _const_spec(shape):
    """BlockSpec for a grid-invariant operand (single-buffered when supported)."""
    nd = len(shape)
    idx = lambda *args: (0,) * nd
    if _buffered1_ok():
        return pl.BlockSpec(shape, idx, pipeline_mode=pl.Buffered(1))
    return pl.BlockSpec(shape, idx)


# ---------------------------------------------------------------------------
# Kernel 1: fused patch-embed (strided conv == patches @ W + b) + VQ argmin.
# Row-tiled over N = B*L flattened patches; bf16 MXU operands, f32 accumulate.
# ---------------------------------------------------------------------------
def encode_vq_kernel(x_ref, w_ref, b_ref, cbT_ref, c2_ref, idx_ref):
    # x_ref: (TN, P) bf16, w_ref: (P, Dc) bf16, b_ref: (1, Dc) f32
    # cbT_ref: (Dc, K) bf16 (pre-transposed), c2_ref: (1, K) f32, idx_ref: (8, TN) i32
    z = jnp.dot(x_ref[...], w_ref[...],
                preferred_element_type=jnp.float32) + b_ref[...]          # (TN, Dc)
    zc = jnp.dot(z.astype(jnp.bfloat16), cbT_ref[...],
                 preferred_element_type=jnp.float32)                      # (TN, K)
    # argmin_k ||z - c_k||^2 == argmin_k (|c_k|^2 - 2 z.c_k); |z|^2 is a per-row
    # constant and is dropped (saves one cross-lane reduction per tile).
    d = c2_ref[...] - 2.0 * zc                                            # (TN, K)
    dmin = jnp.min(d, axis=-1, keepdims=True)
    K = d.shape[-1]
    lane_iota = jax.lax.broadcasted_iota(jnp.int32, d.shape, 1)
    # first index achieving the minimum (matches torch.argmin first-occurrence)
    first = jnp.min(jnp.where(d <= dmin, lane_iota, K), axis=-1)          # (TN,) i32
    # lane-dense slab: replicate over the 8 sublanes -> unmasked stores
    idx_ref[...] = jnp.broadcast_to(first[None, :], idx_ref.shape)


def encode_to_indices(patches, w_patch_bf16, b_patch, cbT_bf16, c2, *, row_tile=512):
    # patches: (N, P) bf16 (pre-cast in extract_patches)
    N, P = patches.shape
    Dc, K = cbT_bf16.shape

    if N < row_tile:
        row_tile = max(8, ((N + 7) // 8) * 8)
    n_pad = pl.cdiv(N, row_tile) * row_tile
    if n_pad != N:
        # padded rows compute garbage indices; they are sliced off below (benign)
        patches = jnp.pad(patches, ((0, n_pad - N), (0, 0)))

    idx_slab = pl.pallas_call(
        encode_vq_kernel,
        out_shape=jax.ShapeDtypeStruct((8, n_pad), jnp.int32),
        grid=(n_pad // row_tile,),
        in_specs=[
            pl.BlockSpec((row_tile, P), lambda i: (i, 0)),
            _const_spec((P, Dc)),
            _const_spec((1, Dc)),
            _const_spec((Dc, K)),
            _const_spec((1, K)),
        ],
        out_specs=pl.BlockSpec((8, row_tile), lambda i: (0, i)),
        compiler_params=pltpu.CompilerParams(
            dimension_semantics=("parallel",),
            vmem_limit_bytes=_VMEM_LIMIT),
    )(patches, w_patch_bf16, b_patch, cbT_bf16, c2)
    return idx_slab[0, :N]                                      # (N,) int32


# ---------------------------------------------------------------------------
# Kernel 2: fused (token-embed + pos) + 1-layer pre-LN transformer + K-tiled
# LM head.  grid = (batch_blocks, Kout_blocks):
#   * k == 0: run the transformer body on the flattened (Bt*L, D) rows and stash
#     the final-LN hidden states in a VMEM scratch (persists across k).
#   * every k: logits block = hidden @ wh[:, k-block] + bh[k-block] (lane-dense).
# ---------------------------------------------------------------------------
def transformer_kernel(
    idx_ref, pos_ref, tokemb_ref,
    ln1g_ref, ln1b_ref,
    wq_ref, bq_ref, wk_ref, bk_ref, wv_ref, bv_ref, wo_ref, bo_ref,
    ln2g_ref, ln2b_ref,
    w1_ref, b1_ref, w2_ref, b2_ref,
    lnfg_ref, lnfb_ref,
    wh_ref, bh_ref,
    o_ref,
    x_sc,
):
    kblk = pl.program_id(1)

    def mm(a, w_ref, b_ref):
        return jnp.dot(a.astype(jnp.bfloat16), w_ref[...],
                       preferred_element_type=jnp.float32) + b_ref[...]

    def layernorm(v, g_ref, b_ref):
        m = jnp.mean(v, axis=-1, keepdims=True)
        var = jnp.mean((v - m) ** 2, axis=-1, keepdims=True)
        return (v - m) * jax.lax.rsqrt(var + 1e-5) * g_ref[...] + b_ref[...]

    @pl.when(kblk == 0)
    def _():
        N = idx_ref.shape[0]                 # Bt * L rows in this block
        L, D = pos_ref.shape
        BT = N // L
        Kcb = tokemb_ref.shape[0]

        # --- token embedding: one-hot @ table on the MXU (fine at small codebooks) ---
        # TODO(synk): swap for a scalar-prefetch row gather at production codebook sizes.
        idx = idx_ref[...]                                               # (N, 1) i32
        onehot = (idx == jax.lax.broadcasted_iota(jnp.int32, (N, Kcb), 1)
                  ).astype(jnp.bfloat16)
        tok = jnp.dot(onehot, tokemb_ref[...],
                      preferred_element_type=jnp.float32)                # (N, D)
        x = (tok.reshape(BT, L, D) + pos_ref[...][None, :, :]).reshape(N, D)

        # --- self attention (single head, bidirectional as in MaskGIT) ---
        h = layernorm(x, ln1g_ref, ln1b_ref)
        q = mm(h, wq_ref, bq_ref).reshape(BT, L, D).astype(jnp.bfloat16)
        k = mm(h, wk_ref, bk_ref).reshape(BT, L, D).astype(jnp.bfloat16)
        v = mm(h, wv_ref, bv_ref).reshape(BT, L, D).astype(jnp.bfloat16)
        att = jnp.einsum("bqd,bkd->bqk", q, k,
                         preferred_element_type=jnp.float32) * (1.0 / math.sqrt(D))
        att = att - jnp.max(att, axis=-1, keepdims=True)
        p = jnp.exp(att)
        p = p * pl.reciprocal(jnp.sum(p, axis=-1, keepdims=True), approx=True)
        y = jnp.einsum("bqk,bkd->bqd", p.astype(jnp.bfloat16), v,
                       preferred_element_type=jnp.float32)
        x = x + mm(y.reshape(N, D), wo_ref, bo_ref)

        # --- MLP (GELU, tanh approximation) ---
        h = layernorm(x, ln2g_ref, ln2b_ref)
        h = mm(h, w1_ref, b1_ref)
        h = 0.5 * h * (1.0 + jnp.tanh(0.7978845608028654 * (h + 0.044715 * h * h * h)))
        x = x + mm(h, w2_ref, b2_ref)

        # final LN -> VMEM scratch, reused by every K block of this batch block
        x_sc[...] = layernorm(x, lnfg_ref, lnfb_ref)

    # --- LM head for this codebook block (lane-dense (rows, kt) output) ---
    o_ref[...] = (jnp.dot(x_sc[...].astype(jnp.bfloat16), wh_ref[...],
                          preferred_element_type=jnp.float32)
                  + bh_ref[...]).astype(o_ref.dtype)


def _pick_bt(B, L, target_rows):
    """Rows-per-step selection: prefer a batch-block grid >= 2 (both v7x TCs busy),
    then the largest block whose rows fit the target (fills the MXU M dimension)."""
    divisors = [d for d in range(1, B + 1) if B % d == 0]
    cand = [d for d in divisors if B // d >= 2] or divisors
    fit = [d for d in cand if d * L <= target_rows] or [min(cand)]
    return max(fit)


def transformer_forward(indices, params, *, target_rows=256, k_tile=2048,
                        out_dtype=jnp.float32):
    B, L = indices.shape
    _, D = params["pos_emb"].shape
    Kout = params["wh_bf16"].shape[1]

    bt = _pick_bt(B, L, target_rows)
    rows = bt * L

    # K-tile for the LM head / logits (bounds VMEM at production codebook sizes)
    kt = k_tile if (Kout > k_tile and Kout % k_tile == 0) else Kout

    idx_col = indices.reshape(B * L, 1).astype(jnp.int32)

    const_args = [
        params["pos_emb"], params["tok_emb_bf16"],
        params["ln1g"], params["ln1b"],
        params["wq_bf16"], params["bq"],
        params["wk_bf16"], params["bk"],
        params["wv_bf16"], params["bv"],
        params["wo_bf16"], params["bo"],
        params["ln2g"], params["ln2b"],
        params["w1_bf16"], params["b1"],
        params["w2_bf16"], params["b2"],
        params["lnfg"], params["lnfb"],
    ]
    const_specs = [_const_spec(a.shape) for a in const_args]

    out = pl.pallas_call(
        transformer_kernel,
        out_shape=jax.ShapeDtypeStruct((B * L, Kout), out_dtype),
        grid=(B // bt, Kout // kt),
        in_specs=(
            [pl.BlockSpec((rows, 1), lambda g, k: (g, 0))]
            + const_specs
            + [pl.BlockSpec((D, kt), lambda g, k: (0, k)),     # wh (K-tiled)
               pl.BlockSpec((1, kt), lambda g, k: (0, k))]     # bh (K-tiled)
        ),
        out_specs=pl.BlockSpec((rows, kt), lambda g, k: (g, k)),
        scratch_shapes=[pltpu.VMEM((rows, D), jnp.float32)],
        compiler_params=pltpu.CompilerParams(
            dimension_semantics=("parallel", "arbitrary"),
            vmem_limit_bytes=_VMEM_LIMIT),
    )(idx_col, *const_args, params["wh_bf16"], params["bh"])
    return out.reshape(B, L, Kout)


# ---------------------------------------------------------------------------
# Parameters + forward()
# ---------------------------------------------------------------------------
def init_params(key, *, cin, patch, d_code, num_codebook, d_model, d_mlp, seq_len):
    ks = jax.random.split(key, 16)
    s = 0.02
    P = cin * patch * patch
    return {
        # VQ encoder
        "w_patch": s * jax.random.normal(ks[0], (P, d_code), jnp.float32),
        "b_patch": jnp.zeros((1, d_code), jnp.float32),
        "codebook": jax.random.normal(ks[1], (num_codebook, d_code), jnp.float32),
        # transformer
        "tok_emb": s * jax.random.normal(ks[2], (num_codebook, d_model), jnp.float32),
        "pos_emb": s * jax.random.normal(ks[3], (seq_len, d_model), jnp.float32),
        "ln1g": jnp.ones((1, d_model), jnp.float32), "ln1b": jnp.zeros((1, d_model), jnp.float32),
        "wq": s * jax.random.normal(ks[4], (d_model, d_model), jnp.float32), "bq": jnp.zeros((1, d_model), jnp.float32),
        "wk": s * jax.random.normal(ks[5], (d_model, d_model), jnp.float32), "bk": jnp.zeros((1, d_model), jnp.float32),
        "wv": s * jax.random.normal(ks[6], (d_model, d_model), jnp.float32), "bv": jnp.zeros((1, d_model), jnp.float32),
        "wo": s * jax.random.normal(ks[7], (d_model, d_model), jnp.float32), "bo": jnp.zeros((1, d_model), jnp.float32),
        "ln2g": jnp.ones((1, d_model), jnp.float32), "ln2b": jnp.zeros((1, d_model), jnp.float32),
        "w1": s * jax.random.normal(ks[8], (d_model, d_mlp), jnp.float32), "b1": jnp.zeros((1, d_mlp), jnp.float32),
        "w2": s * jax.random.normal(ks[9], (d_mlp, d_model), jnp.float32), "b2": jnp.zeros((1, d_model), jnp.float32),
        "lnfg": jnp.ones((1, d_model), jnp.float32), "lnfb": jnp.zeros((1, d_model), jnp.float32),
        "wh": s * jax.random.normal(ks[10], (d_model, num_codebook), jnp.float32),
        "bh": jnp.zeros((1, num_codebook), jnp.float32),
    }


def prepare_params(params):
    """One-time (outside the jitted forward) bf16 weight copies + derived VQ constants.
    Avoids re-casting the full parameter set to bf16 on every forward call."""
    bf16 = jnp.bfloat16
    p = {
        # VQ encoder
        "w_patch_bf16": params["w_patch"].astype(bf16),
        "b_patch": params["b_patch"],
        "cbT_bf16": params["codebook"].T.astype(bf16),                       # (Dc, K)
        "c2": jnp.sum(params["codebook"] * params["codebook"], axis=-1)[None, :],
        # transformer
        "pos_emb": params["pos_emb"],
        "tok_emb_bf16": params["tok_emb"].astype(bf16),
        "ln1g": params["ln1g"], "ln1b": params["ln1b"],
        "bq": params["bq"], "bk": params["bk"], "bv": params["bv"], "bo": params["bo"],
        "ln2g": params["ln2g"], "ln2b": params["ln2b"],
        "b1": params["b1"], "b2": params["b2"],
        "lnfg": params["lnfg"], "lnfb": params["lnfb"],
        "bh": params["bh"],
    }
    for name in ("wq", "wk", "wv", "wo", "w1", "w2", "wh"):
        p[name + "_bf16"] = params[name].astype(bf16)
    return p


def extract_patches(image, patch):
    # image: NCHW -> (B*L, Cin*patch*patch), row-major over (Cin, ph, pw); bf16 stream
    B, C, H, W = image.shape
    Hc, Wc = H // patch, W // patch
    x = image.reshape(B, C, Hc, patch, Wc, patch)
    x = jnp.transpose(x, (0, 2, 4, 1, 3, 5))                 # (B, Hc, Wc, C, ph, pw)
    x = x.reshape(B * Hc * Wc, C * patch * patch).astype(jnp.bfloat16)
    return x, Hc * Wc


@partial(jax.jit, static_argnames=("patch",))
def maskgit_forward(image, params, patch):
    B = image.shape[0]
    patches, L = extract_patches(image, patch)

    # ---- encode_to_z: fused patch-embed + VQ argmin (one Pallas call) ----
    flat_idx = encode_to_indices(
        patches, params["w_patch_bf16"], params["b_patch"],
        params["cbT_bf16"], params["c2"])
    indices = flat_idx.reshape(B, L)                         # (B, L) int32

    # ---- transformer(indices) -> logits over codebook ----
    pred = transformer_forward(indices, params)              # (B, L, K) f32
    return pred, indices


if __name__ == "__main__":
    # small, 128-aligned shapes consistent with forward(): image NCHW
    B, Cin, H, W = 2, 4, 16, 16
    PATCH = 4
    L = (H // PATCH) * (W // PATCH)        # 16 tokens
    D_CODE = 128
    NUM_CODEBOOK = 256
    D_MODEL = 128
    D_MLP = 256

    key = jax.random.PRNGKey(0)
    k_img, k_par = jax.random.split(key)
    image = jax.random.normal(k_img, (B, Cin, H, W), jnp.float32)
    params = init_params(
        k_par,
        cin=Cin, patch=PATCH, d_code=D_CODE, num_codebook=NUM_CODEBOOK,
        d_model=D_MODEL, d_mlp=D_MLP, seq_len=L,
    )
    params = prepare_params(params)   # one-time bf16 casts, outside the jitted forward

    _buffered1_ok()                   # probe pl.Buffered(1) support outside any trace

    pred, target = maskgit_forward(image, params, PATCH)
    jax.block_until_ready((pred, target))

    assert pred.shape == (B, L, NUM_CODEBOOK) and pred.dtype == jnp.float32
    assert target.shape == (B, L) and target.dtype == jnp.int32
    print("KERNEL_OK")
</pallas_src>

<mosaic_0001>
module attributes {stable_mosaic.version = 11 : i64} {
  func.func @k(%arg0: i32, %arg1: memref<8x128xf32, #tpu.memory_space<vmem>>, %arg2: memref<8x128xf32, #tpu.memory_space<vmem>>) attributes {dimension_semantics = [#tpu.dimension_semantics<arbitrary>], iteration_bounds = array<i64: 2>, scalar_prefetch = 0 : i64, scratch_operands = 0 : i64, tpu.core_type = #tpu.core_type<tc>, window_params = [{pipeline_mode = #tpu.pipeline_mode<synchronous>, transform_indices = @transform_0, window_bounds = array<i64: 8, 128>}, {pipeline_mode = #tpu.pipeline_mode<synchronous>, transform_indices = @transform_1, window_bounds = array<i64: 8, 128>}]} {
    %c0 = arith.constant 0 : index
    %c0_0 = arith.constant 0 : index
    %0 = vector.load %arg1[%c0, %c0_0] : memref<8x128xf32, #tpu.memory_space<vmem>>, vector<8x128xf32>
    %cst = arith.constant 1.000000e+00 : f32
    %1 = vector.broadcast %cst : f32 to vector<8x128xf32>
    %2 = arith.addf %0, %1 : vector<8x128xf32>
    %c0_1 = arith.constant 0 : index
    %c0_2 = arith.constant 0 : index
    %3 = vector.load %arg2[%c0_1, %c0_2] : memref<8x128xf32, #tpu.memory_space<vmem>>, vector<8x128xf32>
    tpu.vector_store %arg2[%c0_1, %c0_2], %2 {strides = array<i32>} : memref<8x128xf32, #tpu.memory_space<vmem>>, vector<8x128xf32>,
    return
  }
  func.func @transform_0(%arg0: i32) -> (i32, i32) {
    %c0_i32 = arith.constant 0 : i32
    %c0_i32_0 = arith.constant 0 : i32
    %c0_i32_1 = arith.constant 0 : i32
    return %c0_i32, %c0_i32_0 : i32, i32
  }
  func.func @transform_1(%arg0: i32) -> (i32, i32) {
    %c0_i32 = arith.constant 0 : i32
    %c0_i32_0 = arith.constant 0 : i32
    %c0_i32_1 = arith.constant 0 : i32
    return %c0_i32, %c0_i32_0 : i32, i32
  }
}

module attributes {stable_mosaic.version = 11 : i64} {
  func.func @encode_vq_kernel(%arg0: i32, %arg1: memref<32x64xbf16, #tpu.memory_space<vmem>>, %arg2: memref<64x128xbf16, #tpu.memory_space<vmem>>, %arg3: memref<1x128xf32, #tpu.memory_space<vmem>>, %arg4: memref<128x256xbf16, #tpu.memory_space<vmem>>, %arg5: memref<1x256xf32, #tpu.memory_space<vmem>>, %arg6: memref<8x32xi32, #tpu.memory_space<vmem>>) attributes {dimension_semantics = [#tpu.dimension_semantics<parallel>], iteration_bounds = array<i64: 1>, scalar_prefetch = 0 : i64, scratch_operands = 0 : i64, tpu.core_type = #tpu.core_type<tc>, window_params = [{transform_indices = @transform_0, window_bounds = array<i64: 32, 64>}, {pipeline_mode = #tpu.pipeline_mode<synchronous>, transform_indices = @transform_1, window_bounds = array<i64: 64, 128>}, {pipeline_mode = #tpu.pipeline_mode<synchronous>, transform_indices = @transform_2, window_bounds = array<i64: 1, 128>}, {pipeline_mode = #tpu.pipeline_mode<synchronous>, transform_indices = @transform_3, window_bounds = array<i64: 128, 256>}, {pipeline_mode = #tpu.pipeline_mode<synchronous>, transform_indices = @transform_4, window_bounds = array<i64: 1, 256>}, {transform_indices = @transform_5, window_bounds = array<i64: 8, 32>}]} {
    %c0 = arith.constant 0 : index
    %c0_0 = arith.constant 0 : index
    %0 = vector.load %arg1[%c0, %c0_0] : memref<32x64xbf16, #tpu.memory_space<vmem>>, vector<32x64xbf16>
    %c0_1 = arith.constant 0 : index
    %c0_2 = arith.constant 0 : index
    %1 = vector.load %arg2[%c0_1, %c0_2] : memref<64x128xbf16, #tpu.memory_space<vmem>>, vector<64x128xbf16>
    %cst = arith.constant dense<0.000000e+00> : vector<32x128xf32>
    %2 = tpu.matmul %0, %1, %cst {dimension_numbers = #tpu.dot_dimension_numbers<[1], [0], [0], [1], [0, 0, 1, 1], [], []>} : vector<32x64xbf16>, vector<64x128xbf16>, vector<32x128xf32> -> vector<32x128xf32>
    %c0_3 = arith.constant 0 : index
    %c0_4 = arith.constant 0 : index
    %3 = vector.load %arg3[%c0_3, %c0_4] : memref<1x128xf32, #tpu.memory_space<vmem>>, vector<1x128xf32>
    %4 = vector.broadcast %3 : vector<1x128xf32> to vector<32x128xf32>
    %5 = arith.addf %2, %4 : vector<32x128xf32>
    %6 = arith.truncf %5 : vector<32x128xf32> to vector<32x128xbf16>
    %c0_5 = arith.constant 0 : index
    %c0_6 = arith.constant 0 : index
    %7 = vector.load %arg4[%c0_5, %c0_6] : memref<128x256xbf16, #tpu.memory_space<vmem>>, vector<128x256xbf16>
    %cst_7 = arith.constant dense<0.000000e+00> : vector<32x256xf32>
    %8 = tpu.matmul %6, %7, %cst_7 {dimension_numbers = #tpu.dot_dimension_numbers<[1], [0], [0], [1], [0, 0, 1, 1], [], []>} : vector<32x128xbf16>, vector<128x256xbf16>, vector<32x256xf32> -> vector<32x256xf32>
    %c0_8 = arith.constant 0 : index
    %c0_9 = arith.constant 0 : index
    %9 = vector.load %arg5[%c0_8, %c0_9] : memref<1x256xf32, #tpu.memory_space<vmem>>, vector<1x256xf32>
    %cst_10 = arith.constant 2.000000e+00 : f32
    %10 = vector.broadcast %cst_10 : f32 to vector<32x256xf32>
    %11 = arith.mulf %10, %8 : vector<32x256xf32>
    %12 = vector.broadcast %9 : vector<1x256xf32> to vector<32x256xf32>
    %13 = arith.subf %12, %11 : vector<32x256xf32>
    %cst_11 = arith.constant dense<0x7F800000> : vector<32xf32>
    %14 = vector.multi_reduction <minimumf>, %13, %cst_11 [1] : vector<32x256xf32> to vector<32xf32>
    %15 = vector.shape_cast %14 : vector<32xf32> to vector<32x1xf32>
    %16 = tpu.iota {dimensions = array<i32: 1>} : vector<32x256xi32>
    %17 = vector.broadcast %15 : vector<32x1xf32> to vector<32x256xf32>
    %18 = arith.cmpf ole, %13, %17 : vector<32x256xf32>
    %c256_i32 = arith.constant 256 : i32
    %19 = vector.broadcast %c256_i32 : i32 to vector<32x256xi32>
    %20 = arith.select %18, %16, %19 : vector<32x256xi1>, vector<32x256xi32>
    %cst_12 = arith.constant dense<2147483647> : vector<32xi32>
    %21 = vector.multi_reduction <minsi>, %20, %cst_12 [1] : vector<32x256xi32> to vector<32xi32>
    %22 = vector.shape_cast %21 : vector<32xi32> to vector<1x32xi32>
    %23 = vector.shape_cast %22 : vector<1x32xi32> to vector<1x32xi32>
    %24 = vector.broadcast %23 : vector<1x32xi32> to vector<8x32xi32>
    %c0_13 = arith.constant 0 : index
    %c0_14 = arith.constant 0 : index
    %25 = vector.load %arg6[%c0_13, %c0_14] : memref<8x32xi32, #tpu.memory_space<vmem>>, vector<8x32xi32>
    tpu.vector_store %arg6[%c0_13, %c0_14], %24 {strides = array<i32>} : memref<8x32xi32, #tpu.memory_space<vmem>>, vector<8x32xi32>,
    return
  }
  func.func @transform_0(%arg0: i32) -> (i32, i32) {
    %c0_i32 = arith.constant 0 : i32
    %c0_i32_0 = arith.constant 0 : i32
    return %arg0, %c0_i32 : i32, i32
  }
  func.func @transform_1(%arg0: i32) -> (i32, i32) {
    %c0_i32 = arith.constant 0 : i32
    %c0_i32_0 = arith.constant 0 : i32
    %c0_i32_1 = arith.constant 0 : i32
    return %c0_i32, %c0_i32_0 : i32, i32
  }
  func.func @transform_2(%arg0: i32) -> (i32, i32) {
    %c0_i32 = arith.constant 0 : i32
    %c0_i32_0 = arith.constant 0 : i32
    %c0_i32_1 = arith.constant 0 : i32
    return %c0_i32, %c0_i32_0 : i32, i32
  }
  func.func @transform_3(%arg0: i32) -> (i32, i32) {
    %c0_i32 = arith.constant 0 : i32
    %c0_i32_0 = arith.constant 0 : i32
    %c0_i32_1 = arith.constant 0 : i32
    return %c0_i32, %c0_i32_0 : i32, i32
  }
  func.func @transform_4(%arg0: i32) -> (i32, i32) {
    %c0_i32 = arith.constant 0 : i32
    %c0_i32_0 = arith.constant 0 : i32
    %c0_i32_1 = arith.constant 0 : i32
    return %c0_i32, %c0_i32_0 : i32, i32
  }
  func.func @transform_5(%arg0: i32) -> (i32, i32) {
    %c0_i32 = arith.constant 0 : i32
    %c0_i32_0 = arith.constant 0 : i32
    return %c0_i32, %arg0 : i32, i32
  }
}

module attributes {stable_mosaic.version = 11 : i64} {
  func.func @transformer_kernel(%arg0: i32, %arg1: i32, %arg2: memref<16x1xi32, #tpu.memory_space<vmem>>, %arg3: memref<16x128xf32, #tpu.memory_space<vmem>>, %arg4: memref<256x128xbf16, #tpu.memory_space<vmem>>, %arg5: memref<1x128xf32, #tpu.memory_space<vmem>>, %arg6: memref<1x128xf32, #tpu.memory_space<vmem>>, %arg7: memref<128x128xbf16, #tpu.memory_space<vmem>>, %arg8: memref<1x128xf32, #tpu.memory_space<vmem>>, %arg9: memref<128x128xbf16, #tpu.memory_space<vmem>>, %arg10: memref<1x128xf32, #tpu.memory_space<vmem>>, %arg11: memref<128x128xbf16, #tpu.memory_space<vmem>>, %arg12: memref<1x128xf32, #tpu.memory_space<vmem>>, %arg13: memref<128x128xbf16, #tpu.memory_space<vmem>>, %arg14: memref<1x128xf32, #tpu.memory_space<vmem>>, %arg15: memref<1x128xf32, #tpu.memory_space<vmem>>, %arg16: memref<1x128xf32, #tpu.memory_space<vmem>>, %arg17: memref<128x256xbf16, #tpu.memory_space<vmem>>, %arg18: memref<1x256xf32, #tpu.memory_space<vmem>>, %arg19: memref<256x128xbf16, #tpu.memory_space<vmem>>, %arg20: memref<1x128xf32, #tpu.memory_space<vmem>>, %arg21: memref<1x128xf32, #tpu.memory_space<vmem>>, %arg22: memref<1x128xf32, #tpu.memory_space<vmem>>, %arg23: memref<128x256xbf16, #tpu.memory_space<vmem>>, %arg24: memref<1x256xf32, #tpu.memory_space<vmem>>, %arg25: memref<16x256xf32, #tpu.memory_space<vmem>>, %arg26: memref<16x128xf32, #tpu.memory_space<vmem>>) attributes {dimension_semantics = [#tpu.dimension_semantics<parallel>, #tpu.dimension_semantics<arbitrary>], iteration_bounds = array<i64: 2, 1>, scalar_prefetch = 0 : i64, scratch_operands = 1 : i64, tpu.core_type = #tpu.core_type<tc>, window_params = [{transform_indices = @transform_0, window_bounds = array<i64: 16, 1>}, {pipeline_mode = #tpu.pipeline_mode<synchronous>, transform_indices = @transform_1, window_bounds = array<i64: 16, 128>}, {pipeline_mode = #tpu.pipeline_mode<synchronous>, transform_indices = @transform_2, window_bounds = array<i64: 256, 128>}, {pipeline_mode = #tpu.pipeline_mode<synchronous>, transform_indices = @transform_3, window_bounds = array<i64: 1, 128>}, {pipeline_mode = #tpu.pipeline_mode<synchronous>, transform_indices = @transform_4, window_bounds = array<i64: 1, 128>}, {pipeline_mode = #tpu.pipeline_mode<synchronous>, transform_indices = @transform_5, window_bounds = array<i64: 128, 128>}, {pipeline_mode = #tpu.pipeline_mode<synchronous>, transform_indices = @transform_6, window_bounds = array<i64: 1, 128>}, {pipeline_mode = #tpu.pipeline_mode<synchronous>, transform_indices = @transform_7, window_bounds = array<i64: 128, 128>}, {pipeline_mode = #tpu.pipeline_mode<synchronous>, transform_indices = @transform_8, window_bounds = array<i64: 1, 128>}, {pipeline_mode = #tpu.pipeline_mode<synchronous>, transform_indices = @transform_9, window_bounds = array<i64: 128, 128>}, {pipeline_mode = #tpu.pipeline_mode<synchronous>, transform_indices = @transform_10, window_bounds = array<i64: 1, 128>}, {pipeline_mode = #tpu.pipeline_mode<synchronous>, transform_indices = @transform_11, window_bounds = array<i64: 128, 128>}, {pipeline_mode = #tpu.pipeline_mode<synchronous>, transform_indices = @transform_12, window_bounds = array<i64: 1, 128>}, {pipeline_mode = #tpu.pipeline_mode<synchronous>, transform_indices = @transform_13, window_bounds = array<i64: 1, 128>}, {pipeline_mode = #tpu.pipeline_mode<synchronous>, transform_indices = @transform_14, window_bounds = array<i64: 1, 128>}, {pipeline_mode = #tpu.pipeline_mode<synchronous>, transform_indices = @transform_15, window_bounds = array<i64: 128, 256>}, {pipeline_mode = #tpu.pipeline_mode<synchronous>, transform_indices = @transform_16, window_bounds = array<i64: 1, 256>}, {pipeline_mode = #tpu.pipeline_mode<synchronous>, transform_indices = @transform_17, window_bounds = array<i64: 256, 128>}, {pipeline_mode = #tpu.pipeline_mode<synchronous>, transform_indices = @transform_18, window_bounds = array<i64: 1, 128>}, {pipeline_mode = #tpu.pipeline_mode<synchronous>, transform_indices = @transform_19, window_bounds = array<i64: 1, 128>}, {pipeline_mode = #tpu.pipeline_mode<synchronous>, transform_indices = @transform_20, window_bounds = array<i64: 1, 128>}, {transform_indices = @transform_21, window_bounds = array<i64: 128, 256>}, {transform_indices = @transform_22, window_bounds = array<i64: 1, 256>}, {transform_indices = @transform_23, window_bounds = array<i64: 16, 256>}]} {
    %c0_i32 = arith.constant 0 : i32
    %0 = arith.cmpi eq, %arg1, %c0_i32 : i32
    %1 = arith.extui %0 : i1 to i32
    %c0_i32_0 = arith.constant 0 : i32
    %2 = arith.cmpi ne, %1, %c0_i32_0 : i32
    scf.if %2 {
      %c0_8 = arith.constant 0 : index
      %c0_9 = arith.constant 0 : index
      %11 = vector.load %arg2[%c0_8, %c0_9] : memref<16x1xi32, #tpu.memory_space<vmem>>, vector<16x1xi32>
      %12 = tpu.iota {dimensions = array<i32: 1>} : vector<16x256xi32>
      %13 = vector.broadcast %11 : vector<16x1xi32> to vector<16x256xi32>
      %14 = arith.cmpi eq, %13, %12 : vector<16x256xi32>
      %15 = arith.extui %14 : vector<16x256xi1> to vector<16x256xi32>
      %16 = arith.sitofp %15 : vector<16x256xi32> to vector<16x256xf32>
      %17 = arith.truncf %16 : vector<16x256xf32> to vector<16x256xbf16>
      %c0_10 = arith.constant 0 : index
      %c0_11 = arith.constant 0 : index
      %18 = vector.load %arg4[%c0_10, %c0_11] : memref<256x128xbf16, #tpu.memory_space<vmem>>, vector<256x128xbf16>
      %cst_12 = arith.constant dense<0.000000e+00> : vector<16x128xf32>
      %19 = tpu.matmul %17, %18, %cst_12 {dimension_numbers = #tpu.dot_dimension_numbers<[1], [0], [0], [1], [0, 0, 1, 1], [], []>} : vector<16x256xbf16>, vector<256x128xbf16>, vector<16x128xf32> -> vector<16x128xf32>
      %20 = vector.shape_cast %19 : vector<16x128xf32> to vector<1x16x128xf32>
      %c0_13 = arith.constant 0 : index
      %c0_14 = arith.constant 0 : index
      %21 = vector.load %arg3[%c0_13, %c0_14] : memref<16x128xf32, #tpu.memory_space<vmem>>, vector<16x128xf32>
      %22 = vector.shape_cast %21 : vector<16x128xf32> to vector<1x16x128xf32>
      %23 = arith.addf %20, %22 : vector<1x16x128xf32>
      %24 = vector.shape_cast %23 : vector<1x16x128xf32> to vector<16x128xf32>
      %cst_15 = arith.constant dense<0.000000e+00> : vector<16xf32>
      %25 = vector.multi_reduction <add>, %24, %cst_15 [1] : vector<16x128xf32> to vector<16xf32>
      %26 = vector.shape_cast %25 : vector<16xf32> to vector<16x1xf32>
      %cst_16 = arith.constant 1.280000e+02 : f32
      %27 = vector.broadcast %cst_16 : f32 to vector<16x1xf32>
      %28 = arith.divf %26, %27 : vector<16x1xf32>
      %29 = vector.broadcast %28 : vector<16x1xf32> to vector<16x128xf32>
      %30 = arith.subf %24, %29 : vector<16x128xf32>
      %31 = arith.mulf %30, %30 : vector<16x128xf32>
      %cst_17 = arith.constant dense<0.000000e+00> : vector<16xf32>
      %32 = vector.multi_reduction <add>, %31, %cst_17 [1] : vector<16x128xf32> to vector<16xf32>
      %33 = vector.shape_cast %32 : vector<16xf32> to vector<16x1xf32>
      %cst_18 = arith.constant 1.280000e+02 : f32
      %34 = vector.broadcast %cst_18 : f32 to vector<16x1xf32>
      %35 = arith.divf %33, %34 : vector<16x1xf32>
      %36 = vector.broadcast %28 : vector<16x1xf32> to vector<16x128xf32>
      %37 = arith.subf %24, %36 : vector<16x128xf32>
      %cst_19 = arith.constant 9.99999974E-6 : f32
      %38 = vector.broadcast %cst_19 : f32 to vector<16x1xf32>
      %39 = arith.addf %35, %38 : vector<16x1xf32>
      %40 = math.rsqrt %39 : vector<16x1xf32>
      %41 = vector.broadcast %40 : vector<16x1xf32> to vector<16x128xf32>
      %42 = arith.mulf %37, %41 : vector<16x128xf32>
      %c0_20 = arith.constant 0 : index
      %c0_21 = arith.constant 0 : index
      %43 = vector.load %arg5[%c0_20, %c0_21] : memref<1x128xf32, #tpu.memory_space<vmem>>, vector<1x128xf32>
      %44 = vector.broadcast %43 : vector<1x128xf32> to vector<16x128xf32>
      %45 = arith.mulf %42, %44 : vector<16x128xf32>
      %c0_22 = arith.constant 0 : index
      %c0_23 = arith.constant 0 : index
      %46 = vector.load %arg6[%c0_22, %c0_23] : memref<1x128xf32, #tpu.memory_space<vmem>>, vector<1x128xf32>
      %47 = vector.broadcast %46 : vector<1x128xf32> to vector<16x128xf32>
      %48 = arith.addf %45, %47 : vector<16x128xf32>
      %49 = arith.truncf %48 : vector<16x128xf32> to vector<16x128xbf16>
      %c0_24 = arith.constant 0 : index
      %c0_25 = arith.constant 0 : index
      %50 = vector.load %arg7[%c0_24, %c0_25] : memref<128x128xbf16, #tpu.memory_space<vmem>>, vector<128x128xbf16>
      %cst_26 = arith.constant dense<0.000000e+00> : vector<16x128xf32>
      %51 = tpu.matmul %49, %50, %cst_26 {dimension_numbers = #tpu.dot_dimension_numbers<[1], [0], [0], [1], [0, 0, 1, 1], [], []>} : vector<16x128xbf16>, vector<128x128xbf16>, vector<16x128xf32> -> vector<16x128xf32>
      %c0_27 = arith.constant 0 : index
      %c0_28 = arith.constant 0 : index
      %52 = vector.load %arg8[%c0_27, %c0_28] : memref<1x128xf32, #tpu.memory_space<vmem>>, vector<1x128xf32>
      %53 = vector.broadcast %52 : vector<1x128xf32> to vector<16x128xf32>
      %54 = arith.addf %51, %53 : vector<16x128xf32>
      %55 = vector.shape_cast %54 : vector<16x128xf32> to vector<1x16x128xf32>
      %56 = arith.truncf %55 : vector<1x16x128xf32> to vector<1x16x128xbf16>
      %57 = arith.truncf %48 : vector<16x128xf32> to vector<16x128xbf16>
      %c0_29 = arith.constant 0 : index
      %c0_30 = arith.constant 0 : index
      %58 = vector.load %arg9[%c0_29, %c0_30] : memref<128x128xbf16, #tpu.memory_space<vmem>>, vector<128x128xbf16>
      %cst_31 = arith.constant dense<0.000000e+00> : vector<16x128xf32>
      %59 = tpu.matmul %57, %58, %cst_31 {dimension_numbers = #tpu.dot_dimension_numbers<[1], [0], [0], [1], [0, 0, 1, 1], [], []>} : vector<16x128xbf16>, vector<128x128xbf16>, vector<16x128xf32> -> vector<16x128xf32>
      %c0_32 = arith.constant 0 : index
      %c0_33 = arith.constant 0 : index
      %60 = vector.load %arg10[%c0_32, %c0_33] : memref<1x128xf32, #tpu.memory_space<vmem>>, vector<1x128xf32>
      %61 = vector.broadcast %60 : vector<1x128xf32> to vector<16x128xf32>
      %62 = arith.addf %59, %61 : vector<16x128xf32>
      %63 = vector.shape_cast %62 : vector<16x128xf32> to vector<1x16x128xf32>
      %64 = arith.truncf %63 : vector<1x16x128xf32> to vector<1x16x128xbf16>
      %65 = arith.truncf %48 : vector<16x128xf32> to vector<16x128xbf16>
      %c0_34 = arith.constant 0 : index
      %c0_35 = arith.constant 0 : index
      %66 = vector.load %arg11[%c0_34, %c0_35] : memref<128x128xbf16, #tpu.memory_space<vmem>>, vector<128x128xbf16>
      %cst_36 = arith.constant dense<0.000000e+00> : vector<16x128xf32>
      %67 = tpu.matmul %65, %66, %cst_36 {dimension_numbers = #tpu.dot_dimension_numbers<[1], [0], [0], [1], [0, 0, 1, 1], [], []>} : vector<16x128xbf16>, vector<128x128xbf16>, vector<16x128xf32> -> vector<16x128xf32>
      %c0_37 = arith.constant 0 : index
      %c0_38 = arith.constant 0 : index
      %68 = vector.load %arg12[%c0_37, %c0_38] : memref<1x128xf32, #tpu.memory_space<vmem>>, vector<1x128xf32>
      %69 = vector.broadcast %68 : vector<1x128xf32> to vector<16x128xf32>
      %70 = arith.addf %67, %69 : vector<16x128xf32>
      %71 = vector.shape_cast %70 : vector<16x128xf32> to vector<1x16x128xf32>
      %72 = arith.truncf %71 : vector<1x16x128xf32> to vector<1x16x128xbf16>
      "tpu.trace_start"() <{level = 10 : i32, message = "bqd,bkd->bqk"}> : () -> ()
      %cst_39 = arith.constant dense<0.000000e+00> : vector<1x16x16xf32>
      %73 = tpu.matmul %56, %64, %cst_39 {dimension_numbers = #tpu.dot_dimension_numbers<[2], [2], [1], [1], [0, 0, 0, 1, 1, 1], [0], [0]>} : vector<1x16x128xbf16>, vector<1x16x128xbf16>, vector<1x16x16xf32> -> vector<1x16x16xf32>
      "tpu.trace_stop"() : () -> ()
      %cst_40 = arith.constant 0.0883883461 : f32
      %74 = vector.broadcast %cst_40 : f32 to vector<1x16x16xf32>
      %75 = arith.mulf %73, %74 : vector<1x16x16xf32>
      %cst_41 = arith.constant dense<0xFF800000> : vector<1x16xf32>
      %76 = vector.multi_reduction <maximumf>, %75, %cst_41 [2] : vector<1x16x16xf32> to vector<1x16xf32>
      %77 = vector.shape_cast %76 : vector<1x16xf32> to vector<1x16x1xf32>
      %78 = vector.broadcast %77 : vector<1x16x1xf32> to vector<1x16x16xf32>
      %79 = arith.subf %75, %78 : vector<1x16x16xf32>
      %80 = math.exp %79 : vector<1x16x16xf32>
      %cst_42 = arith.constant dense<0.000000e+00> : vector<1x16xf32>
      %81 = vector.multi_reduction <add>, %80, %cst_42 [2] : vector<1x16x16xf32> to vector<1x16xf32>
      %82 = vector.shape_cast %81 : vector<1x16xf32> to vector<1x16x1xf32>
      %83 = tpu.reciprocal %82 {approx = true} : vector<1x16x1xf32> -> vector<1x16x1xf32>
      %84 = vector.broadcast %83 : vector<1x16x1xf32> to vector<1x16x16xf32>
      %85 = arith.mulf %80, %84 : vector<1x16x16xf32>
      %86 = arith.truncf %85 : vector<1x16x16xf32> to vector<1x16x16xbf16>
      "tpu.trace_start"() <{level = 10 : i32, message = "bqk,bkd->bqd"}> : () -> ()
      %cst_43 = arith.constant dense<0.000000e+00> : vector<1x16x128xf32>
      %87 = tpu.matmul %86, %72, %cst_43 {dimension_numbers = #tpu.dot_dimension_numbers<[2], [1], [1], [2], [0, 0, 0, 1, 1, 2], [0], [0]>} : vector<1x16x16xbf16>, vector<1x16x128xbf16>, vector<1x16x128xf32> -> vector<1x16x128xf32>
      "tpu.trace_stop"() : () -> ()
      %88 = vector.shape_cast %87 : vector<1x16x128xf32> to vector<16x128xf32>
      %89 = arith.truncf %88 : vector<16x128xf32> to vector<16x128xbf16>
      %c0_44 = arith.constant 0 : index
      %c0_45 = arith.constant 0 : index
      %90 = vector.load %arg13[%c0_44, %c0_45] : memref<128x128xbf16, #tpu.memory_space<vmem>>, vector<128x128xbf16>
      %cst_46 = arith.constant dense<0.000000e+00> : vector<16x128xf32>
      %91 = tpu.matmul %89, %90, %cst_46 {dimension_numbers = #tpu.dot_dimension_numbers<[1], [0], [0], [1], [0, 0, 1, 1], [], []>} : vector<16x128xbf16>, vector<128x128xbf16>, vector<16x128xf32> -> vector<16x128xf32>
      %c0_47 = arith.constant 0 : index
      %c0_48 = arith.constant 0 : index
      %92 = vector.load %arg14[%c0_47, %c0_48] : memref<1x128xf32, #tpu.memory_space<vmem>>, vector<1x128xf32>
      %93 = vector.broadcast %92 : vector<1x128xf32> to vector<16x128xf32>
      %94 = arith.addf %91, %93 : vector<16x128xf32>
      %95 = arith.addf %24, %94 : vector<16x128xf32>
      %cst_49 = arith.constant dense<0.000000e+00> : vector<16xf32>
      %96 = vector.multi_reduction <add>, %95, %cst_49 [1] : vector<16x128xf32> to vector<16xf32>
      %97 = vector.shape_cast %96 : vector<16xf32> to vector<16x1xf32>
      %cst_50 = arith.constant 1.280000e+02 : f32
      %98 = vector.broadcast %cst_50 : f32 to vector<16x1xf32>
      %99 = arith.divf %97, %98 : vector<16x1xf32>
      %100 = vector.broadcast %99 : vector<16x1xf32> to vector<16x128xf32>
      %101 = arith.subf %95, %100 : vector<16x128xf32>
      %102 = arith.mulf %101, %101 : vector<16x128xf32>
      %cst_51 = arith.constant dense<0.000000e+00> : vector<16xf32>
      %103 = vector.multi_reduction <add>, %102, %cst_51 [1] : vector<16x128xf32> to vector<16xf32>
      %104 = vector.shape_cast %103 : vector<16xf32> to vector<16x1xf32>
      %cst_52 = arith.constant 1.280000e+02 : f32
      %105 = vector.broadcast %cst_52 : f32 to vector<16x1xf32>
      %106 = arith.divf %104, %105 : vector<16x1xf32>
      %107 = vector.broadcast %99 : vector<16x1xf32> to vector<16x128xf32>
      %108 = arith.subf %95, %107 : vector<16x128xf32>
      %cst_53 = arith.constant 9.99999974E-6 : f32
      %109 = vector.broadcast %cst_53 : f32 to vector<16x1xf32>
      %110 = arith.addf %106, %109 : vector<16x1xf32>
      %111 = math.rsqrt %110 : vector<16x1xf32>
      %112 = vector.broadcast %111 : vector<16x1xf32> to vector<16x128xf32>
      %113 = arith.mulf %108, %112 : vector<16x128xf32>
      %c0_54 = arith.constant 0 : index
      %c0_55 = arith.constant 0 : index
      %114 = vector.load %arg15[%c0_54, %c0_55] : memref<1x128xf32, #tpu.memory_space<vmem>>, vector<1x128xf32>
      %115 = vector.broadcast %114 : vector<1x128xf32> to vector<16x128xf32>
      %116 = arith.mulf %113, %115 : vector<16x128xf32>
      %c0_56 = arith.constant 0 : index
      %c0_57 = arith.constant 0 : index
      %117 = vector.load %arg16[%c0_56, %c0_57] : memref<1x128xf32, #tpu.memory_space<vmem>>, vector<1x128xf32>
      %118 = vector.broadcast %117 : vector<1x128xf32> to vector<16x128xf32>
      %119 = arith.addf %116, %118 : vector<16x128xf32>
      %120 = arith.truncf %119 : vector<16x128xf32> to vector<16x128xbf16>
      %c0_58 = arith.constant 0 : index
      %c0_59 = arith.constant 0 : index
      %121 = vector.load %arg17[%c0_58, %c0_59] : memref<128x256xbf16, #tpu.memory_space<vmem>>, vector<128x256xbf16>
      %cst_60 = arith.constant dense<0.000000e+00> : vector<16x256xf32>
      %122 = tpu.matmul %120, %121, %cst_60 {dimension_numbers = #tpu.dot_dimension_numbers<[1], [0], [0], [1], [0, 0, 1, 1], [], []>} : vector<16x128xbf16>, vector<128x256xbf16>, vector<16x256xf32> -> vector<16x256xf32>
      %c0_61 = arith.constant 0 : index
      %c0_62 = arith.constant 0 : index
      %123 = vector.load %arg18[%c0_61, %c0_62] : memref<1x256xf32, #tpu.memory_space<vmem>>, vector<1x256xf32>
      %124 = vector.broadcast %123 : vector<1x256xf32> to vector<16x256xf32>
      %125 = arith.addf %122, %124 : vector<16x256xf32>
      %cst_63 = arith.constant 5.000000e-01 : f32
      %126 = vector.broadcast %cst_63 : f32 to vector<16x256xf32>
      %127 = arith.mulf %126, %125 : vector<16x256xf32>
      %cst_64 = arith.constant 4.471500e-02 : f32
      %128 = vector.broadcast %cst_64 : f32 to vector<16x256xf32>
      %129 = arith.mulf %128, %125 : vector<16x256xf32>
      %130 = arith.mulf %129, %125 : vector<16x256xf32>
      %131 = arith.mulf %130, %125 : vector<16x256xf32>
      %132 = arith.addf %125, %131 : vector<16x256xf32>
      %cst_65 = arith.constant 0.797884583 : f32
      %133 = vector.broadcast %cst_65 : f32 to vector<16x256xf32>
      %134 = arith.mulf %133, %132 : vector<16x256xf32>
      %135 = math.tanh %134 : vector<16x256xf32>
      %cst_66 = arith.constant 1.000000e+00 : f32
      %136 = vector.broadcast %cst_66 : f32 to vector<16x256xf32>
      %137 = arith.addf %136, %135 : vector<16x256xf32>
      %138 = arith.mulf %127, %137 : vector<16x256xf32>
      %139 = arith.truncf %138 : vector<16x256xf32> to vector<16x256xbf16>
      %c0_67 = arith.constant 0 : index
      %c0_68 = arith.constant 0 : index
      %140 = vector.load %arg19[%c0_67, %c0_68] : memref<256x128xbf16, #tpu.memory_space<vmem>>, vector<256x128xbf16>
      %cst_69 = arith.constant dense<0.000000e+00> : vector<16x128xf32>
      %141 = tpu.matmul %139, %140, %cst_69 {dimension_numbers = #tpu.dot_dimension_numbers<[1], [0], [0], [1], [0, 0, 1, 1], [], []>} : vector<16x256xbf16>, vector<256x128xbf16>, vector<16x128xf32> -> vector<16x128xf32>
      %c0_70 = arith.constant 0 : index
      %c0_71 = arith.constant 0 : index
      %142 = vector.load %arg20[%c0_70, %c0_71] : memref<1x128xf32, #tpu.memory_space<vmem>>, vector<1x128xf32>
      %143 = vector.broadcast %142 : vector<1x128xf32> to vector<16x128xf32>
      %144 = arith.addf %141, %143 : vector<16x128xf32>
      %145 = arith.addf %95, %144 : vector<16x128xf32>
      %cst_72 = arith.constant dense<0.000000e+00> : vector<16xf32>
      %146 = vector.multi_reduction <add>, %145, %cst_72 [1] : vector<16x128xf32> to vector<16xf32>
      %147 = vector.shape_cast %146 : vector<16xf32> to vector<16x1xf32>
      %cst_73 = arith.constant 1.280000e+02 : f32
      %148 = vector.broadcast %cst_73 : f32 to vector<16x1xf32>
      %149 = arith.divf %147, %148 : vector<16x1xf32>
      %150 = vector.broadcast %149 : vector<16x1xf32> to vector<16x128xf32>
      %151 = arith.subf %145, %150 : vector<16x128xf32>
      %152 = arith.mulf %151, %151 : vector<16x128xf32>
      %cst_74 = arith.constant dense<0.000000e+00> : vector<16xf32>
      %153 = vector.multi_reduction <add>, %152, %cst_74 [1] : vector<16x128xf32> to vector<16xf32>
      %154 = vector.shape_cast %153 : vector<16xf32> to vector<16x1xf32>
      %cst_75 = arith.constant 1.280000e+02 : f32
      %155 = vector.broadcast %cst_75 : f32 to vector<16x1xf32>
      %156 = arith.divf %154, %155 : vector<16x1xf32>
      %157 = vector.broadcast %149 : vector<16x1xf32> to vector<16x128xf32>
      %158 = arith.subf %145, %157 : vector<16x128xf32>
      %cst_76 = arith.constant 9.99999974E-6 : f32
      %159 = vector.broadcast %cst_76 : f32 to vector<16x1xf32>
      %160 = arith.addf %156, %159 : vector<16x1xf32>
      %161 = math.rsqrt %160 : vector<16x1xf32>
      %162 = vector.broadcast %161 : vector<16x1xf32> to vector<16x128xf32>
      %163 = arith.mulf %158, %162 : vector<16x128xf32>
      %c0_77 = arith.constant 0 : index
      %c0_78 = arith.constant 0 : index
      %164 = vector.load %arg21[%c0_77, %c0_78] : memref<1x128xf32, #tpu.memory_space<vmem>>, vector<1x128xf32>
      %165 = vector.broadcast %164 : vector<1x128xf32> to vector<16x128xf32>
      %166 = arith.mulf %163, %165 : vector<16x128xf32>
      %c0_79 = arith.constant 0 : index
      %c0_80 = arith.constant 0 : index
      %167 = vector.load %arg22[%c0_79, %c0_80] : memref<1x128xf32, #tpu.memory_space<vmem>>, vector<1x128xf32>
      %168 = vector.broadcast %167 : vector<1x128xf32> to vector<16x128xf32>
      %169 = arith.addf %166, %168 : vector<16x128xf32>
      %c0_81 = arith.constant 0 : index
      %c0_82 = arith.constant 0 : index
      %170 = vector.load %arg26[%c0_81, %c0_82] : memref<16x128xf32, #tpu.memory_space<vmem>>, vector<16x128xf32>
      tpu.vector_store %arg26[%c0_81, %c0_82], %169 {strides = array<i32>} : memref<16x128xf32, #tpu.memory_space<vmem>>, vector<16x128xf32>,
    } else {
    }
    %c0 = arith.constant 0 : index
    %c0_1 = arith.constant 0 : index
    %3 = vector.load %arg26[%c0, %c0_1] : memref<16x128xf32, #tpu.memory_space<vmem>>, vector<16x128xf32>
    %4 = arith.truncf %3 : vector<16x128xf32> to vector<16x128xbf16>
    %c0_2 = arith.constant 0 : index
    %c0_3 = arith.constant 0 : index
    %5 = vector.load %arg23[%c0_2, %c0_3] : memref<128x256xbf16, #tpu.memory_space<vmem>>, vector<128x256xbf16>
    %cst = arith.constant dense<0.000000e+00> : vector<16x256xf32>
    %6 = tpu.matmul %4, %5, %cst {dimension_numbers = #tpu.dot_dimension_numbers<[1], [0], [0], [1], [0, 0, 1, 1], [], []>} : vector<16x128xbf16>, vector<128x256xbf16>, vector<16x256xf32> -> vector<16x256xf32>
    %c0_4 = arith.constant 0 : index
    %c0_5 = arith.constant 0 : index
    %7 = vector.load %arg24[%c0_4, %c0_5] : memref<1x256xf32, #tpu.memory_space<vmem>>, vector<1x256xf32>
    %8 = vector.broadcast %7 : vector<1x256xf32> to vector<16x256xf32>
    %9 = arith.addf %6, %8 : vector<16x256xf32>
    %c0_6 = arith.constant 0 : index
    %c0_7 = arith.constant 0 : index
    %10 = vector.load %arg25[%c0_6, %c0_7] : memref<16x256xf32, #tpu.memory_space<vmem>>, vector<16x256xf32>
    tpu.vector_store %arg25[%c0_6, %c0_7], %9 {strides = array<i32>} : memref<16x256xf32, #tpu.memory_space<vmem>>, vector<16x256xf32>,
    return
  }
  func.func @transform_0(%arg0: i32, %arg1: i32) -> (i32, i32) {
    %c0_i32 = arith.constant 0 : i32
    %c0_i32_0 = arith.constant 0 : i32
    return %arg0, %c0_i32 : i32, i32
  }
  func.func @transform_1(%arg0: i32, %arg1: i32) -> (i32, i32) {
    %c0_i32 = arith.constant 0 : i32
    %c0_i32_0 = arith.constant 0 : i32
    %c0_i32_1 = arith.constant 0 : i32
    return %c0_i32, %c0_i32_0 : i32, i32
  }
  func.func @transform_2(%arg0: i32, %arg1: i32) -> (i32, i32) {
    %c0_i32 = arith.constant 0 : i32
    %c0_i32_0 = arith.constant 0 : i32
    %c0_i32_1 = arith.constant 0 : i32
    return %c0_i32, %c0_i32_0 : i32, i32
  }
  func.func @transform_3(%arg0: i32, %arg1: i32) -> (i32, i32) {
    %c0_i32 = arith.constant 0 : i32
    %c0_i32_0 = arith.constant 0 : i32
    %c0_i32_1 = arith.constant 0 : i32
    return %c0_i32, %c0_i32_0 : i32, i32
  }
  func.func @transform_4(%arg0: i32, %arg1: i32) -> (i32, i32) {
    %c0_i32 = arith.constant 0 : i32
    %c0_i32_0 = arith.constant 0 : i32
    %c0_i32_1 = arith.constant 0 : i32
    return %c0_i32, %c0_i32_0 : i32, i32
  }
  func.func @transform_5(%arg0: i32, %arg1: i32) -> (i32, i32) {
    %c0_i32 = arith.constant 0 : i32
    %c0_i32_0 = arith.constant 0 : i32
    %c0_i32_1 = arith.constant 0 : i32
    return %c0_i32, %c0_i32_0 : i32, i32
  }
  func.func @transform_6(%arg0: i32, %arg1: i32) -> (i32, i32) {
    %c0_i32 = arith.constant 0 : i32
    %c0_i32_0 = arith.constant 0 : i32
    %c0_i32_1 = arith.constant 0 : i32
    return %c0_i32, %c0_i32_0 : i32, i32
  }
  func.func @transform_7(%arg0: i32, %arg1: i32) -> (i32, i32) {
    %c0_i32 = arith.constant 0 : i32
    %c0_i32_0 = arith.constant 0 : i32
    %c0_i32_1 = arith.constant 0 : i32
    return %c0_i32, %c0_i32_0 : i32, i32
  }
  func.func @transform_8(%arg0: i32, %arg1: i32) -> (i32, i32) {
    %c0_i32 = arith.constant 0 : i32
    %c0_i32_0 = arith.constant 0 : i32
    %c0_i32_1 = arith.constant 0 : i32
    return %c0_i32, %c0_i32_0 : i32, i32
  }
  func.func @transform_9(%arg0: i32, %arg1: i32) -> (i32, i32) {
    %c0_i32 = arith.constant 0 : i32
    %c0_i32_0 = arith.constant 0 : i32
    %c0_i32_1 = arith.constant 0 : i32
    return %c0_i32, %c0_i32_0 : i32, i32
  }
  func.func @transform_10(%arg0: i32, %arg1: i32) -> (i32, i32) {
    %c0_i32 = arith.constant 0 : i32
    %c0_i32_0 = arith.constant 0 : i32
    %c0_i32_1 = arith.constant 0 : i32
    return %c0_i32, %c0_i32_0 : i32, i32
  }
  func.func @transform_11(%arg0: i32, %arg1: i32) -> (i32, i32) {
    %c0_i32 = arith.constant 0 : i32
    %c0_i32_0 = arith.constant 0 : i32
    %c0_i32_1 = arith.constant 0 : i32
    return %c0_i32, %c0_i32_0 : i32, i32
  }
  func.func @transform_12(%arg0: i32, %arg1: i32) -> (i32, i32) {
    %c0_i32 = arith.constant 0 : i32
    %c0_i32_0 = arith.constant 0 : i32
    %c0_i32_1 = arith.constant 0 : i32
    return %c0_i32, %c0_i32_0 : i32, i32
  }
  func.func @transform_13(%arg0: i32, %arg1: i32) -> (i32, i32) {
    %c0_i32 = arith.constant 0 : i32
    %c0_i32_0 = arith.constant 0 : i32
    %c0_i32_1 = arith.constant 0 : i32
    return %c0_i32, %c0_i32_0 : i32, i32
  }
  func.func @transform_14(%arg0: i32, %arg1: i32) -> (i32, i32) {
    %c0_i32 = arith.constant 0 : i32
    %c0_i32_0 = arith.constant 0 : i32
    %c0_i32_1 = arith.constant 0 : i32
    return %c0_i32, %c0_i32_0 : i32, i32
  }
  func.func @transform_15(%arg0: i32, %arg1: i32) -> (i32, i32) {
    %c0_i32 = arith.constant 0 : i32
    %c0_i32_0 = arith.constant 0 : i32
    %c0_i32_1 = arith.constant 0 : i32
    return %c0_i32, %c0_i32_0 : i32, i32
  }
  func.func @transform_16(%arg0: i32, %arg1: i32) -> (i32, i32) {
    %c0_i32 = arith.constant 0 : i32
    %c0_i32_0 = arith.constant 0 : i32
    %c0_i32_1 = arith.constant 0 : i32
    return %c0_i32, %c0_i32_0 : i32, i32
  }
  func.func @transform_17(%arg0: i32, %arg1: i32) -> (i32, i32) {
    %c0_i32 = arith.constant 0 : i32
    %c0_i32_0 = arith.constant 0 : i32
    %c0_i32_1 = arith.constant 0 : i32
    return %c0_i32, %c0_i32_0 : i32, i32
  }
  func.func @transform_18(%arg0: i32, %arg1: i32) -> (i32, i32) {
    %c0_i32 = arith.constant 0 : i32
    %c0_i32_0 = arith.constant 0 : i32
    %c0_i32_1 = arith.constant 0 : i32
    return %c0_i32, %c0_i32_0 : i32, i32
  }
  func.func @transform_19(%arg0: i32, %arg1: i32) -> (i32, i32) {
    %c0_i32 = arith.constant 0 : i32
    %c0_i32_0 = arith.constant 0 : i32
    %c0_i32_1 = arith.constant 0 : i32
    return %c0_i32, %c0_i32_0 : i32, i32
  }
  func.func @transform_20(%arg0: i32, %arg1: i32) -> (i32, i32) {
    %c0_i32 = arith.constant 0 : i32
    %c0_i32_0 = arith.constant 0 : i32
    %c0_i32_1 = arith.constant 0 : i32
    return %c0_i32, %c0_i32_0 : i32, i32
  }
  func.func @transform_21(%arg0: i32, %arg1: i32) -> (i32, i32) {
    %c0_i32 = arith.constant 0 : i32
    %c0_i32_0 = arith.constant 0 : i32
    return %c0_i32, %arg1 : i32, i32
  }
  func.func @transform_22(%arg0: i32, %arg1: i32) -> (i32, i32) {
    %c0_i32 = arith.constant 0 : i32
    %c0_i32_0 = arith.constant 0 : i32
    return %c0_i32, %arg1 : i32, i32
  }
  func.func @transform_23(%arg0: i32, %arg1: i32) -> (i32, i32) {
    %c0_i32 = arith.constant 0 : i32
    return %arg0, %arg1 : i32, i32
  }
}

</mosaic_0001>

<bundles_post_ra>
// kernel: tpu_custom_call.1
= control target key start
LH: loop header
LB: loop body
LE: loop exit
PB: predicated region body
PF: predicated region fallthrough
CT: control target
= control target key end

     0   :  { %6 = vsyncpa [#allocation3], 0  ;;  %s341_s0 = inlined_call_operand.hbm [shape: f32[8,128], index: 0, kind: input, shape index: {}]   ;;  %s342_s1 = inlined_call_operand.hbm [shape: f32[8,128], index: 1, kind: output, shape index: {}]  }
   0x1   :  { %7 = vsyncpa [#allocation4], 0  ;;  %s262_s6 = smov 0  }
   0x2 LB: > { %s145_s7 = sadd.s32 4294967295, %s248_s6   ;;  %p146_p0 = scmp.ge.s32.totalorder %s248_s6, 1  ;;  %s248_s6 = sphi %s262_s6, %s13_s6  }
   0x3   : > { %p60_p1 = scmp.lt.s32.totalorder %s248_s6, 3  ;;  %p276_p3 = scmp.eq.s32.totalorder %s145_s7, 0 }
   0x4   : > { %s250_s10 = smov [#allocation2]   ;;  %s180_s15 = scalar_lea.hbm %s341_s0, 128 }
   0x5   : > { %p270_p2 = pnand %p146_p0, %p60_p1  ;;  %s73_s11 = sshll.u32 %s250_s10, 4  ;;  %s74_s11 = int_to_ptr.vmem [resolvable:$true] %s73_s11 }
   0x6   : > { %s347_s9 = scalar_select %p276_p3, 1, 0 }
   0x7   : > { %s346_s8 = scalar_select %p270_p2, 1, 0 }
   0x8   : > { %p162_p4 = pneg %p270_p2  ;;  %p181_p6 = scmp.ne.s32.totalorder %s341_s0, %s180_s15 }
   0x9   : > { %p187_p10 = scmp.lt.u32.totalorder %s180_s15, %s341_s0 }
   0xa   : > { %p284_p5 = pnand %p276_p3, %p162_p4 }
   0xc   : > { %p182_p7 = pneg %p284_p5 }
   0xe   : > { %p183_p8 = pnand %p182_p7, %p181_p6 }
  0x10   : > { %p184_p9 = pneg %p183_p8 }
  0x12   : > { %p189_p11 = pnand %p187_p10, %p184_p9 }
  0x14   : > { %192 = shalt.err (!%p189_p11)
}
  0x15   : > { %s193_s20 = scalar_lea.vmem %s74_s11, 128  ;;  %p201_p1 = scmp.lt.s32.totalorder %s74_s11, %s74_s11 }
  0x16   : > { %p194_p12 = scmp.ne.s32.totalorder %s74_s11, %s193_s20  ;;  %p202_p4 = scmp.lt.s32.totalorder %s193_s20, %s193_s20 }
  0x18   : > { %p196_p13 = pnand %p194_p12, %p182_p7  ;;  %p203_p3 = por %p202_p4, %p201_p1 }
  0x1a   : > { %p197_p0 = pneg %p196_p13 }
  0x1c   : > { %p204_p2 = pnand %p203_p3, %p197_p0 }
  0x1e   : > { %207 = shalt.err (!%p204_p2)
}
  0x1f   : > { %165 = dma.hbm_to_vmem [thread:$0]  (!%p284_p5), %s341_s0, 128, %s74_s11, [#allocation3]  }
  0x20   : > { %p349_p6 = scmp.ne.s32.totalorder %s346_s8, 0 }
  0x21   : > { %p350_p8 = scmp.ne.s32.totalorder (!%p349_p6), %s347_s9, 0 }
  0x22   : > { %86 = sbr.rel (%p349_p6) target bundleno = 67 (0x43), region = 24 }
  0x29   : > { %239 = dma.done.wait (%p350_p8), [#allocation3], 128  }
  0x2a   : > { %241 = vsyncadd (%p350_p8), [#allocation3], 4294967168  ;;  %s251_s23 = smov [#allocation5]   ;;  %v96_v0 = vld [vmem:[#allocation2] sm:$0xff]  ;;  %p312_p2 = scmp.eq.s32.totalorder %s145_s7, 1 }
  0x2b   : > { %s106_s24 = sshll.u32 %s251_s23, 4  ;;  %v97_v1 = vadd.f32 1.0, %v96_v0  ;;  %s107_s24 = int_to_ptr.vmem [resolvable:$true] %s106_s24 }
  0x2c   : > { %s208_s26 = scalar_lea.vmem %s107_s24, 128  ;;  %p215_p9 = scmp.lt.s32.totalorder %s107_s24, %s107_s24 }
  0x2d   : > { %98 = vst [vmem:[#allocation5] sm:$0xff] %v97_v1  ;;  %p209_p3 = scmp.ne.s32.totalorder %s107_s24, %s208_s26  ;;  %p216_p10 = scmp.lt.s32.totalorder %s208_s26, %s208_s26 }
  0x2f   : > { %p210_p5 = pnand %p209_p3, %p312_p2  ;;  %p217_p11 = por %p216_p10, %p215_p9 }
  0x31   : > { %p211_p7 = pneg %p210_p5 }
  0x33   : > { %p218_p12 = pnand %p217_p11, %p211_p7 }
  0x35   : > { %221 = shalt.err (!%p218_p12)
}
  0x36   : > { %s222_s29 = scalar_lea.hbm %s342_s1, 128 }
  0x37   : > { %p223_p13 = scmp.ne.s32.totalorder %s342_s1, %s222_s29  ;;  %p228_p4 = scmp.lt.u32.totalorder %s222_s29, %s342_s1 }
  0x39   : > { %p224_p0 = pnand %p223_p13, %p312_p2 }
  0x3b   : > { %p225_p1 = pneg %p224_p0 }
  0x3d   : > { %p230_p6 = pnand %p228_p4, %p225_p1 }
  0x3f   : > { %233 = shalt.err (!%p230_p6)
}
  0x40   : > { %159 = dma.vmem_to_hbm [thread:$0]  (%p312_p2), %s107_s24, 128, %s342_s1, [#allocation4]  }
  0x41   : > { %243 = dma.done.wait (%p312_p2), [#allocation4], 128  }
  0x42   : > { %245 = vsyncadd (%p312_p2), [#allocation4], 4294967168 }
  0x43 PF: > { %s13_s6 = sadd.s32 1, %s248_s6  }
  0x44   : > { %p10_p8 = scmp.ge.s32.totalorder %s13_s6, 4  }
  0x46   :  { %12 = sbr.rel (!%p10_p8) target bundleno = 2 (0x2), region = 53 }
  0x4d   :  { %119 = vsyncpa [#allocation3], 1 }
  0x4e   :  { %121 = vsyncpa [#allocation3 + $0x1], 1 }
  0x4f   :  { %122 = vsyncpa [#allocation4], 1 }
  0x50   :  { %124 = vsyncpa [#allocation4 + $0x1], 1 }

// kernel: squeeze.2
= control target key start
LH: loop header
LB: loop body
LE: loop exit
PB: predicated region body
PF: predicated region fallthrough
CT: control target
= control target key end

     0   :  { %s85_s0 = inlined_call_operand.vmem [shape: s32[32], index: 0, kind: input, shape index: {}]   ;;  %s86_s1 = inlined_call_operand.hbm [shape: s32[2,16], index: 1, kind: output, shape index: {}]  }
   0x1   :  { %v5_v0 = vld [vmem:[%s85_s0] sm:$0x1] }
   0x2   :  { %2 = vsyncpa [#allocation1], 0  ;;  %6 = vst [vmem:[#allocation3] sm:$0x1] %v5_v0  ;;  %vm8_vm0 = vcmask 130048   ;;  %s58_s0 = smov 112  }
   0x3   :  { %s59_s8 = smov [#allocation0]  }
   0x4   :  { %s26_s9 = sshll.u32 %s59_s8, 4  ;;  %s27_s9 = int_to_ptr.vmem [resolvable:$true] %s26_s9 }
   0x5   :  { %s34_s10 = scalar_lea.vmem %s27_s9, 32  ;;  %p39_p1 = scmp.lt.s32.totalorder %s27_s9, %s27_s9 }
   0x6   :  { %p35_p0 = scmp.ne.s32.totalorder %s27_s9, %s34_s10  ;;  %p40_p2 = scmp.lt.s32.totalorder %s34_s10, %s34_s10 }
   0x8   :  { %p41_p3 = por %p40_p2, %p39_p1 }
   0x9   :  { %v10_v1 = vld [vmem:[#allocation3] sm:$0x1]  }
   0xa   :  { %v7_v2 = vld [vmem:[#allocation3] sm:$0x1]   ;;  %11 = vrot.lane.b32.xlu0 %v10_v1, %s58_s0  ;;  %p42_p4 = pnand %p41_p3, %p35_p0 }
   0xb   :  { %9 = vst.msk [vmem:[#allocation2] sm:$0x1] %vm8_vm0, %v7_v2  }
  0x7c   :  { %v12_v3 = vpop.permute.xlu0 %11  }
  0x7d   :  { %15 = vst.msk [vmem:[#allocation2 + $0x1] sm:$0x1] %vm8_vm0, %v12_v3  }
  0x84   :  { %v19_v4 = vld [vmem:[#allocation2] sm:$0x3] }
  0x85   :  { %21 = vst [vmem:[#allocation0] sm:$0x3] %v19_v4 }
  0x86   :  { %45 = shalt.err (!%p42_p4)
}
  0x87   :  { %s46_s13 = scalar_lea.hbm %s86_s1, 32 }
  0x88   :  { %p47_p5 = scmp.ne.s32.totalorder %s86_s1, %s46_s13  ;;  %p50_p6 = scmp.lt.u32.totalorder %s46_s13, %s86_s1 }
  0x8a   :  { %p52_p7 = pnand %p50_p6, %p47_p5 }
  0x8c   :  { %55 = shalt.err (!%p52_p7)
}
  0x8d   :  { %29 = dma.vmem_to_hbm [thread:$0]  %s27_s9, 32, %s86_s1, [#allocation1]  }
  0x8e   :  { %56 = dma.done.wait [#allocation1], 32  }
  0x8f   :  { %57 = vsyncadd [#allocation1], 4294967264 }
  0x90   :  { %31 = vsyncpa [#allocation1], 1 }

// kernel: maskgit_forward.2
= control target key start
LH: loop header
LB: loop body
LE: loop exit
PB: predicated region body
PF: predicated region fallthrough
CT: control target
= control target key end

     0   :  { %vm74_vm0 = vcmask 523264   ;;  %v521_v22 = vmov 0   ;;  %v291_v34 = vlaneseq  ;;  %s648_s1 = inlined_call_operand.vmem [shape: bf16[64,128], index: 1, kind: input, shape index: {}]   ;;  %s649_s0 = inlined_call_operand.vmem [shape: bf16[32,64], index: 0, kind: input, shape index: {}]   ;;  %s650_s3 = inlined_call_operand.vmem [shape: bf16[128,256], index: 3, kind: input, shape index: {}]   ;;  %s651_s2 = inlined_call_operand.vmem [shape: f32[1,128], index: 2, kind: input, shape index: {}]   ;;  %s652_s4 = inlined_call_operand.vmem [shape: f32[1,256], index: 4, kind: input, shape index: {}]   ;;  %s653_s5 = inlined_call_operand.vmem [shape: s32[8,32], index: 5, kind: output, shape index: {}]  }
   0x1   :  { %v491_v0 = vld [vmem:[%s648_s1] sm:$0xff]   ;;  %v492_v1 = vld [vmem:[%s648_s1 + $0x8] sm:$0xff]   ;;  %v493_v2 = vld [vmem:[%s648_s1 + $0x10] sm:$0xff]   ;;  %260 = vmatprep.mubr.bf16.mxu1 %v521_v22 }
   0x2   :  { %478 = vmatprep.subr.bf16.mxu0 %v491_v0  ;;  %v495_v3 = vld [vmem:[%s649_s0] sm:$0xff]   ;;  %v494_v6 = vld [vmem:[%s648_s1 + $0x18] sm:$0xff]   ;;  %v496_v10 = vld [vmem:[%s649_s0 + $0x8] sm:$0xff]   ;;  %v623_v35 = vshrl.u32 %v291_v34, 7 }
   0x3   :  { %479 = vmatpush3.bf16.msra.mxu0 %v491_v0  ;;  %486 = vmatprep.mubr.msk.bf16.mxu0 %vm74_vm0, %v495_v3  ;;  %v497_v4 = vld [vmem:[%s650_s3 + $0x4] ss:$8 sps:$4 sm:$0xff]   ;;  %v499_v5 = vld [vmem:[%s650_s3] ss:$8 sps:$4 sm:$0xff]   ;;  %v500_v7 = vld [vmem:[%s650_s3 + $0x14] ss:$8 sps:$4 sm:$0xff]  }
   0x4   :  { %480 = vmatprep.subr.bf16.mxu0 %v492_v1  ;;  %228 = vmatprep.subr.bf16.mxu1 %v497_v4  ;;  %v502_v8 = vld [vmem:[%s650_s3 + $0x10] ss:$8 sps:$4 sm:$0xff]   ;;  %v503_v9 = vld [vmem:[%s650_s3 + $0x24] ss:$8 sps:$4 sm:$0xff]   ;;  %v505_v11 = vld [vmem:[%s650_s3 + $0x20] ss:$8 sps:$4 sm:$0xff]  }
   0x5   :  { %229 = vmatpush1.bf16.msra.mxu1 %v499_v5  ;;  %v506_v12 = vld [vmem:[%s650_s3 + $0x34] ss:$8 sps:$4 sm:$0xff]   ;;  %v508_v13 = vld [vmem:[%s650_s3 + $0x30] ss:$8 sps:$4 sm:$0xff]   ;;  %v509_v14 = vld [vmem:[%s650_s3 + $0x44] ss:$8 sps:$4 sm:$0xff]  }
   0x6   :  { %230 = vmatprep.subr.bf16.mxu1 %v500_v7  ;;  %v511_v15 = vld [vmem:[%s650_s3 + $0x40] ss:$8 sps:$4 sm:$0xff]   ;;  %v512_v16 = vld [vmem:[%s650_s3 + $0x54] ss:$8 sps:$4 sm:$0xff]   ;;  %v514_v17 = vld [vmem:[%s650_s3 + $0x50] ss:$8 sps:$4 sm:$0xff]  }
   0x7   :  { %481 = vmatpush3.bf16.msra.mxu0 %v492_v1  ;;  %v515_v18 = vld [vmem:[%s650_s3 + $0x64] ss:$8 sps:$4 sm:$0xff]   ;;  %v517_v19 = vld [vmem:[%s650_s3 + $0x60] ss:$8 sps:$4 sm:$0xff]   ;;  %v518_v20 = vld [vmem:[%s650_s3 + $0x74] ss:$8 sps:$4 sm:$0xff]  }
   0x8   :  { %482 = vmatprep.subr.bf16.mxu0 %v493_v2  ;;  %v520_v21 = vld [vmem:[%s650_s3 + $0x70] ss:$8 sps:$4 sm:$0xff]   ;;  %v447_v24 = vld [vmem:[%s651_s2] ss:$0 sm:$0xff]  ;;  %v293_v36 = vsub.s32 0, %v623_v35  ;;  %v297_v38 = vsub.s32 1, %v623_v35 }
   0x9   :  { %231 = vmatpush1.bf16.msra.mxu1 %v502_v8  ;;  %v281_v37 = vld [vmem:[%s652_s4] sm:$0x3]  ;;  %v630_v5 = vand.u32 127, %v291_v34 }
   0xa   :  { %232 = vmatprep.subr.bf16.mxu1 %v503_v9  ;;  %v294_v39 = vrot.slane %v281_v37, %v293_v36  ;;  %v298_v41 = vrot.slane %v281_v37, %v297_v38 }
   0xb   :  { %483 = vmatpush3.bf16.msra.mxu0 %v493_v2 }
   0xc   :  { %484 = vmatprep.subr.bf16.mxu0 %v494_v6 }
   0xd   :  { %233 = vmatpush1.bf16.msra.mxu1 %v505_v11 }
   0xe   :  { %234 = vmatprep.subr.bf16.mxu1 %v506_v12 }
   0xf   :  { %485 = vmatpush3.bf16.msra.mxu0 %v494_v6  ;;  %v323_v6 = vadd.s32 128, %v630_v5 }
  0x11   :  { %235 = vmatpush1.bf16.msra.mxu1 %v508_v13 }
  0x12   :  { %487 = vmatmul.mubr.msk.bf16.vlgmr.msra.gmra.mrb[0].mxu0 %vm74_vm0, %v496_v10  ;;  %236 = vmatprep.subr.bf16.mxu1 %v509_v14 }
  0x15   :  { %237 = vmatpush1.bf16.msra.mxu1 %v511_v15 }
  0x16   :  { %238 = vmatprep.subr.bf16.mxu1 %v512_v16 }
  0x19   :  { %239 = vmatpush1.bf16.msra.mxu1 %v514_v17 }
  0x1a   :  { %240 = vmatprep.subr.bf16.mxu1 %v515_v18 }
  0x1d   :  { %241 = vmatpush1.bf16.msra.mxu1 %v517_v19 }
  0x1e   :  { %242 = vmatprep.subr.bf16.mxu1 %v518_v20 }
  0x21   :  { %243 = vmatpush1.bf16.msra.mxu1 %v520_v21 }
  0xe5   :  { %v488_v23 = vpop.f32.mrb[0].mxu0 }
  0xe6   :  { %v115_v25 = vpop.f32.mrb[1].mxu0  ;;  %v124_v27 = vadd.f32 %v488_v23, %v447_v24 }
  0xe7   :  { %v489_v26 = vpop.f32.mrb[2].mxu0  ;;  %v116_v30 = vadd.f32 %v447_v24, %v115_v25 }
  0xe8   :  { %v127_v28 = vadd.f32 %v489_v26, %v447_v24  ;;  %v118_v29 = vpop.f32.mrb[3].mxu0 }
  0xe9   :  { %v119_v31 = vadd.f32 %v447_v24, %v118_v29 }
  0xea   :  { %v131_v32 = vpack.c.bf16 %v127_v28, %v124_v27 }
  0xeb   :  { %v130_v33 = vpack.c.bf16 %v119_v31, %v116_v30 }
  0xed   :  { %261 = vmatmul.mubr.bf16.vlgmr.msra.gmra.mrb[0].mxu1 %v130_v33 }
  0xee   :  { %270 = vmatprep.mubr.bf16.mxu1 %v521_v22 }
  0xf5   :  { %271 = vmatmul.mubr.bf16.gmra.mrb[4].mxu1 %v131_v32 }
 0x1c0   :  { %v262_v40 = vpop.f32.mrb[0].mxu1 }
 0x1c1   :  { %v282_v42 = vmul.f32 2.0, %v262_v40  ;;  %v264_v43 = vpop.f32.mrb[1].mxu1 }
 0x1c2   :  { %v283_v44 = vmul.f32 2.0, %v264_v43  ;;  %v266_v45 = vpop.f32.mrb[2].mxu1 }
 0x1c3   :  { %v284_v46 = vmul.f32 2.0, %v266_v45  ;;  %v268_v47 = vpop.f32.mrb[3].mxu1  ;;  %v301_v48 = vsub.f32 %v294_v39, %v282_v42 }
 0x1c4   :  { %v285_v49 = vmul.f32 2.0, %v268_v47  ;;  %v302_v50 = vsub.f32 %v298_v41, %v283_v44 }
 0x1c5   :  { %v303_v51 = vsub.f32 %v294_v39, %v284_v46 }
 0x1c6   :  { %v304_v52 = vsub.f32 %v298_v41, %v285_v49  ;;  %v309_v53 = vmin.f32 %v301_v48, %v302_v50 }
 0x1c8   :  { %310 = vmin.xlane.f32.xlu0 %v309_v53  ;;  %v272_v54 = vpop.f32.mrb[4].mxu1  ;;  %v312_v59 = vmin.f32 %v303_v51, %v304_v52 }
 0x1c9   :  { %v286_v55 = vmul.f32 2.0, %v272_v54  ;;  %v274_v56 = vpop.f32.mrb[5].mxu1 }
 0x1ca   :  { %v287_v57 = vmul.f32 2.0, %v274_v56  ;;  %v276_v58 = vpop.f32.mrb[6].mxu1 }
 0x1cb   :  { %v288_v60 = vmul.f32 2.0, %v276_v58  ;;  %v278_v61 = vpop.f32.mrb[7].mxu1  ;;  %v305_v62 = vsub.f32 %v294_v39, %v286_v55  ;;  %v406_v55 = vsub.s32 %v630_v5, %v623_v35 }
 0x1cc   :  { %v289_v63 = vmul.f32 2.0, %v278_v61  ;;  %313 = vmin.xlane.f32.xlu0 %v312_v59  ;;  %v306_v0 = vsub.f32 %v298_v41, %v287_v57  ;;  %v415_v61 = vadd.s32 4294967280, %v630_v5 }
 0x1cd   :  { %v307_v1 = vsub.f32 %v294_v39, %v288_v60 }
 0x1ce   :  { %v308_v2 = vsub.f32 %v298_v41, %v289_v63  ;;  %v315_v3 = vmin.f32 %v305_v62, %v306_v0 }
 0x1d0   :  { %316 = vmin.xlane.f32.xlu1 %v315_v3  ;;  %v318_v4 = vmin.f32 %v307_v1, %v308_v2 }
 0x1d4   :  { %319 = vmin.xlane.f32.xlu1 %v318_v4 }
 0x255   :  { %v311_v7 = vpop.xlane.xlu0 %310 }
 0x256   :  { %vm324_vm1 = vcmp.le.f32.partialorder %v301_v48, %v311_v7  ;;  %vm325_vm2 = vcmp.le.f32.partialorder %v302_v50, %v311_v7  ;;  %v418_v7 = vsub.s32 %v415_v61, %v623_v35 }
 0x257   :  { %v332_v8 = vsel %vm324_vm1, %v630_v5, 256  ;;  %v333_v9 = vsel %vm325_vm2, %v323_v6, 256  ;;  %vm413_vm1 = vcmask 130112   ;;  %vm420_vm2 = vcmask 195712  }
 0x258   :  { %vm340_vm3 = vcmp.lt.s32.totalorder %v332_v8, %v333_v9 }
 0x259   :  { %v314_v10 = vpop.xlane.xlu0 %313  ;;  %v341_v11 = vsel %vm340_vm3, %v332_v8, %v333_v9  ;;  %vm427_vm3 = vcmask 261312  }
 0x25a   :  { %vm326_vm4 = vcmp.le.f32.partialorder %v303_v51, %v314_v10  ;;  %vm327_vm5 = vcmp.le.f32.partialorder %v304_v52, %v314_v10  ;;  %v343_v12 = vshra.s32 %v341_v11, 16  ;;  %v342_v31 = vand.u32 65535, %v341_v11 }
 0x25b   :  { %v334_v13 = vsel %vm326_vm4, %v630_v5, 256  ;;  %v335_v14 = vsel %vm327_vm5, %v323_v6, 256  ;;  %v408_v52 = vadd.s32 4294967288, %v630_v5  ;;  %vm441_vm4 = vcmask 261120  }
 0x25c   :  { %vm356_vm6 = vcmp.lt.s32.totalorder %v334_v13, %v335_v14  ;;  %v345_v15 = vcvt.s32.f32 %v343_v12  ;;  %v344_v33 = vcvt.s32.f32 %v342_v31 }
 0x25d   :  { %v317_v16 = vpop.xlane.xlu1 %316  ;;  %v357_v17 = vsel %vm356_vm6, %v334_v13, %v335_v14  ;;  %v411_v59 = vsub.s32 %v408_v52, %v623_v35 }
 0x25e   :  { %vm328_vm7 = vcmp.le.f32.partialorder %v305_v62, %v317_v16  ;;  %vm329_vm8 = vcmp.le.f32.partialorder %v306_v0, %v317_v16  ;;  %346 = vmin.xlane.f32.xlu0 %v345_v15  ;;  %v359_v18 = vshra.s32 %v357_v17, 16  ;;  %v358_v34 = vand.u32 65535, %v357_v17 }
 0x25f   :  { %v336_v19 = vsel %vm328_vm7, %v630_v5, 256  ;;  %v337_v20 = vsel %vm329_vm8, %v323_v6, 256 }
 0x260   :  { %vm372_vm9 = vcmp.lt.s32.totalorder %v336_v19, %v337_v20  ;;  %v361_v21 = vcvt.s32.f32 %v359_v18  ;;  %v360_v38 = vcvt.s32.f32 %v358_v34 }
 0x261   :  { %v320_v22 = vpop.xlane.xlu1 %319  ;;  %v373_v23 = vsel %vm372_vm9, %v336_v19, %v337_v20 }
 0x262   :  { %vm330_vm10 = vcmp.le.f32.partialorder %v307_v1, %v320_v22  ;;  %vm331_vm11 = vcmp.le.f32.partialorder %v308_v2, %v320_v22  ;;  %362 = vmin.xlane.f32.xlu1 %v361_v21  ;;  %v375_v24 = vshra.s32 %v373_v23, 16  ;;  %v374_v39 = vand.u32 65535, %v373_v23 }
 0x263   :  { %v338_v25 = vsel %vm330_vm10, %v630_v5, 256  ;;  %v339_v26 = vsel %vm331_vm11, %v323_v6, 256  ;;  %v422_v6 = vadd.s32 4294967272, %v630_v5 }
 0x264   :  { %vm388_vm12 = vcmp.lt.s32.totalorder %v338_v25, %v339_v26  ;;  %v377_v27 = vcvt.s32.f32 %v375_v24  ;;  %v376_v42 = vcvt.s32.f32 %v374_v39 }
 0x265   :  { %v389_v28 = vsel %vm388_vm12, %v338_v25, %v339_v26  ;;  %v425_v12 = vsub.s32 %v422_v6, %v623_v35 }
 0x266   :  { %378 = vmin.xlane.f32.xlu0 %v377_v27  ;;  %v391_v29 = vshra.s32 %v389_v28, 16  ;;  %v390_v43 = vand.u32 65535, %v389_v28 }
 0x268   :  { %v393_v30 = vcvt.s32.f32 %v391_v29  ;;  %v392_v46 = vcvt.s32.f32 %v390_v43 }
 0x26a   :  { %394 = vmin.xlane.f32.xlu1 %v393_v30 }
 0x2eb   :  { %v347_v32 = vpop.xlane.xlu0 %346 }
 0x2ec   :  { %vm348_vm13 = vcmp.eq.f32.partialorder %v345_v15, %v347_v32  ;;  %v353_v48 = vcvt.f32.s32 %v347_v32 }
 0x2ed   :  { %v349_v36 = vsel %vm348_vm13, %v344_v33, inf }
 0x2ee   :  { %350 = vmin.xlane.f32.xlu0 %v349_v36  ;;  %v354_v53 = vshll.u32 %v353_v48, 16 }
 0x2ef   :  { %v363_v37 = vpop.xlane.xlu1 %362 }
 0x2f0   :  { %vm364_vm14 = vcmp.eq.f32.partialorder %v361_v21, %v363_v37  ;;  %v369_v50 = vcvt.f32.s32 %v363_v37 }
 0x2f1   :  { %v365_v40 = vsel %vm364_vm14, %v360_v38, inf }
 0x2f2   :  { %366 = vmin.xlane.f32.xlu1 %v365_v40  ;;  %v370_v57 = vshll.u32 %v369_v50, 16 }
 0x2f3   :  { %v379_v41 = vpop.xlane.xlu0 %378 }
 0x2f4   :  { %vm380_vm15 = vcmp.eq.f32.partialorder %v377_v27, %v379_v41  ;;  %v385_v54 = vcvt.f32.s32 %v379_v41 }
 0x2f5   :  { %v381_v44 = vsel %vm380_vm15, %v376_v42, inf }
 0x2f6   :  { %382 = vmin.xlane.f32.xlu0 %v381_v44  ;;  %v386_v63 = vshll.u32 %v385_v54, 16 }
 0x2f7   :  { %v395_v45 = vpop.xlane.xlu1 %394 }
 0x2f8   :  { %vm396_vm0 = vcmp.eq.f32.partialorder %v393_v30, %v395_v45  ;;  %v401_v0 = vcvt.f32.s32 %v395_v45 }
 0x2f9   :  { %v397_v47 = vsel %vm396_vm0, %v392_v46, inf }
 0x2fa   :  { %398 = vmin.xlane.f32.xlu1 %v397_v47  ;;  %v402_v11 = vshll.u32 %v401_v0, 16 }
 0x37b   :  { %v351_v49 = vpop.xlane.xlu0 %350 }
 0x37c   :  { %v352_v51 = vcvt.f32.s32 %v351_v49 }
 0x37e   :  { %v355_v58 = vadd.s32 %v354_v53, %v352_v51 }
 0x37f   :  { %v367_v56 = vpop.xlane.xlu1 %366 }
 0x380   :  { %v368_v60 = vcvt.f32.s32 %v367_v56  ;;  %v407_v2 = vrot.slane %v355_v58, %v406_v55 }
 0x382   :  { %v371_v62 = vadd.s32 %v370_v57, %v368_v60 }
 0x383   :  { %v383_v1 = vpop.xlane.xlu0 %382 }
 0x384   :  { %v412_v3 = vrot.slane %v371_v62, %v411_v59  ;;  %v384_v4 = vcvt.f32.s32 %v383_v1 }
 0x386   :  { %v414_v8 = vsel %vm413_vm1, %v412_v3, %v407_v2  ;;  %v387_v9 = vadd.s32 %v386_v63, %v384_v4 }
 0x387   :  { %v399_v10 = vpop.xlane.xlu1 %398 }
 0x388   :  { %v400_v13 = vcvt.f32.s32 %v399_v10  ;;  %v419_v14 = vrot.slane %v387_v9, %v418_v7 }
 0x38a   :  { %v403_v15 = vadd.s32 %v402_v11, %v400_v13  ;;  %v421_v17 = vsel %vm420_vm2, %v419_v14, %v414_v8 }
 0x38c   :  { %v426_v16 = vrot.slane %v403_v15, %v425_v12 }
 0x38e   :  { %v428_v18 = vsel %vm427_vm3, %v426_v16, %v421_v17 }
 0x38f   :  { %442 = vst.msk [vmem:[%s653_s5] sm:$0xff] %vm441_vm4, %v428_v18 }

// kernel: maskgit_forward.3
= control target key start
LH: loop header
LB: loop body
LE: loop exit
PB: predicated region body
PF: predicated region fallthrough
CT: control target
= control target key end

     0   :  { %s3557_s0 = inlined_call_operand.vmem [shape: s32[32,1], index: 0, kind: input, shape index: {}]   ;;  %s3558_s1 = inlined_call_operand.vmem [shape: f32[16,128], index: 1, kind: input, shape index: {}]   ;;  %s3559_s2 = inlined_call_operand.vmem [shape: bf16[256,128], index: 2, kind: input, shape index: {}]   ;;  %s3560_s3 = inlined_call_operand.vmem [shape: f32[1,128], index: 3, kind: input, shape index: {}]   ;;  %s3561_s4 = inlined_call_operand.vmem [shape: f32[1,128], index: 4, kind: input, shape index: {}]   ;;  %s3562_s5 = inlined_call_operand.vmem [shape: bf16[128,128], index: 5, kind: input, shape index: {}]   ;;  %s3563_s6 = inlined_call_operand.vmem [shape: f32[1,128], index: 6, kind: input, shape index: {}]   ;;  %s3564_s7 = inlined_call_operand.vmem [shape: bf16[128,128], index: 7, kind: input, shape index: {}]   ;;  %s3565_s8 = inlined_call_operand.vmem [shape: f32[1,128], index: 8, kind: input, shape index: {}]   ;;  %s3566_s9 = inlined_call_operand.vmem [shape: bf16[128,128], index: 9, kind: input, shape index: {}]   ;;  %s3567_s10 = inlined_call_operand.vmem [shape: f32[1,128], index: 10, kind: input, shape index: {}]   ;;  %s3568_s11 = inlined_call_operand.vmem [shape: bf16[128,128], index: 11, kind: input, shape index: {}]   ;;  %s3569_s12 = inlined_call_operand.vmem [shape: f32[1,128], index: 12, kind: input, shape index: {}]   ;;  %s3570_s13 = inlined_call_operand.vmem [shape: f32[1,128], index: 13, kind: input, shape index: {}]   ;;  %s3571_s14 = inlined_call_operand.vmem [shape: f32[1,128], index: 14, kind: input, shape index: {}]   ;;  %s3572_s15 = inlined_call_operand.vmem [shape: bf16[128,256], index: 15, kind: input, shape index: {}]   ;;  %s3573_s16 = inlined_call_operand.vmem [shape: f32[1,256], index: 16, kind: input, shape index: {}]   ;;  %s3574_s17 = inlined_call_operand.vmem [shape: bf16[256,128], index: 17, kind: input, shape index: {}]   ;;  %s3575_s18 = inlined_call_operand.vmem [shape: f32[1,128], index: 18, kind: input, shape index: {}]   ;;  %s3576_s19 = inlined_call_operand.vmem [shape: f32[1,128], index: 19, kind: input, shape index: {}]   ;;  %s3577_s20 = inlined_call_operand.vmem [shape: f32[1,128], index: 20, kind: input, shape index: {}]   ;;  %s3578_s21 = inlined_call_operand.vmem [shape: bf16[128,256], index: 21, kind: input, shape index: {}]   ;;  %s3579_s22 = inlined_call_operand.vmem [shape: f32[1,256], index: 22, kind: input, shape index: {}]   ;;  %s3580_s23 = inlined_call_operand.hbm [shape: f32[32,256], index: 23, kind: output, shape index: {}]  }
   0x1   :  { %3598 = sst [smem:[#allocation14_spill]] %s3557_s0 }
   0x2   :  { %3599 = sst [smem:[#allocation15_spill]] %s3558_s1 }
   0x3   :  { %3600 = sst [smem:[#allocation16_spill]] %s3559_s2 }
   0x4   :  { %3601 = sst [smem:[#allocation17_spill]] %s3560_s3 }
   0x5   :  { %3602 = sst [smem:[#allocation18_spill]] %s3561_s4 }
   0x6   :  { %3603 = sst [smem:[#allocation19_spill]] %s3562_s5 }
   0x7   :  { %3604 = sst [smem:[#allocation20_spill]] %s3563_s6 }
   0x8   :  { %3605 = sst [smem:[#allocation21_spill]] %s3564_s7 }
   0x9   :  { %3606 = sst [smem:[#allocation22_spill]] %s3579_s22 }
   0xa   :  { %3607 = sst [smem:[#allocation23_spill]] %s3580_s23 }
   0xb   :  { %28 = vsyncpa [#allocation4], 0 }
   0xc   :  { %30 = vsyncpa [#allocation4 + $0x1], 0  ;;  %s3022_s4 = smov 0   ;;  %s3024_s30 = smov 0  }
   0xd   :  { %s3026_s24 = smov 0   ;;  %s3028_s25 = smov 0  }
   0xe   :  { %s3030_s5 = smov 0   ;;  %s3032_s1 = smov 0  }
   0xf LB: > { %3608 = sst [smem:[#allocation6_spill]] %s2873_s4  ;;  %s2303_s26 = sadd.s32 4294967295, %s2893_s1   ;;  %s2893_s1 = sphi %s3032_s1, %s36_s1   ;;  %s2889_s5 = sphi %s3030_s5, %s3637_s5   ;;  %s2885_s25 = sphi %s3028_s25, %s3636_s25   ;;  %s2881_s24 = sphi %s3026_s24, %s3635_s24   ;;  %s2877_s30 = sphi %s3024_s30, %s3639_s30   ;;  %s2873_s4 = sphi %s3022_s4, %s3638_s4  }
  0x10   : > { %3609 = sst [smem:[#allocation7_spill]] %s2881_s24  ;;  %s2304_s2 = sadd.s32 4294967294, %s2893_s1  }
  0x11   : > { %3610 = sst [smem:[#allocation8_spill]] %s2889_s5  ;;  %s48_s6 = sadd.s32 1, %s2889_s5 }
  0x12   : > { %3611 = sst [smem:[#allocation9_spill]] %s2893_s1  ;;  %s555_s27 = sadd.s32 1, %s2881_s24 }
  0x13   : > { %p50_p0 = scmp.ge.s32.totalorder %s48_s6, 2  ;;  %p565_p1 = scmp.ne.s32.totalorder %s2881_s24, %s2877_s30 }
  0x14   : > { %p566_p2 = scmp.eq.s32.totalorder %s2303_s26, 1  ;;  %p571_p3 = scmp.ne.s32.totalorder %s2877_s30, %s2873_s4 }
  0x15   : > { %s3641_s6 = smov (%p50_p0, %s48_s6), 0  ;;  %p572_p5 = scmp.eq.s32.totalorder %s2304_s2, 1 }
  0x16   : > { %3612 = sst [smem:[#allocation10_spill]] %s3641_s6  ;;  %p3062_p4 = por %p566_p2, %p565_p1 }
  0x17   : > { %s550_s28 = ssub.s32 %s2889_s5, %s3641_s6  ;;  %p2309_p6 = scmp.ge.s32.totalorder %s2893_s1, 1 }
  0x18   : > { %s3613_s7 = scalar_select %p3062_p4, 1, 0 }
  0x19   : > { %p553_p7 = scmp.eq.s32.totalorder %s550_s28, 0  ;;  %p3069_p8 = por %p572_p5, %p571_p3 }
  0x1a   : > { %3614 = sst [smem:[#allocation11_spill]] %s3613_s7  ;;  %p676_p9 = scmp.lt.s32.totalorder %s2893_s1, 3 }
  0x1b   : > { %s3615_s29 = scalar_select %p3069_p8, 1, 0 }
  0x1c   : > { %s3075_s3 = scalar_select %p553_p7, %s2881_s24, %s555_s27  }
  0x1d   : > { %3616 = sst [smem:[#allocation12_spill]] %s3615_s29  ;;  %p677_p10 = pnand %p2309_p6, %p676_p9 }
  0x1e   : > { %3617 = sst [smem:[#allocation13_spill]] %s3075_s3  ;;  %s2311_s0 = sshll.u32 (!%p677_p10), %s2885_s25, 1  ;;  %v2895_v0 = vmov (!%p677_p10), 0   ;;  %v775_v19 = vlaneseq (!%p677_p10)  ;;  %v2896_v24 = vmov (!%p677_p10), 1.0|1.0   ;;  %v2897_v37 = vmov (!%p677_p10), 0.0  }
  0x1f   : > { %680 = sbr.rel (%p677_p10) target bundleno = 3231 (0xc9f), region = 112  ;;  %2674 = vset.pattern.permute.xlu0 (!%p677_p10), %v2895_v0  ;;  %p750_p11 = scmp.lt.s32.totalorder (!%p677_p10), %s2311_s0, 3  ;;  %2521 = vmatprep.subr.bf16.mxu1 (!%p677_p10), %v2897_v37  ;;  %vm2898_vm6 = vmmov (!%p677_p10), 0   ;;  %vm1395_vm7 = vcmask (!%p677_p10), 130048  }
  0x20   : > { %s3618_s6 = sld [smem:[#allocation16_spill]] (!%p677_p10)  ;;  %s3619_s28 = sld [smem:[#allocation14_spill]] (!%p677_p10)  ;;  %v776_v20 = vand.u32 (!%p677_p10), 127, %v775_v19  ;;  %2537 = vmatprep.mubr.msk.bf16.mxu1 (!%p677_p10), %vm2898_vm6, %v2897_v37 }
  0x21   : > { %s3620_s7 = sld [smem:[#allocation15_spill]] (!%p677_p10)  ;;  %s3622_s1 = sld [smem:[#allocation21_spill]] (!%p677_p10) }
  0x22   : > { %v777_v22 = vadd.s32 (!%p677_p10), 128, %v776_v20  ;;  %s3624_s24 = sld [smem:[#allocation17_spill]] (!%p677_p10)  ;;  %s746_s5 = sand.u32 (!%p677_p10), 1, %s2877_s30  }
  0x23   : > { %s2436_s27 = sshll.u32 (!%p677_p10), %s2885_s25, 9  ;;  %s3511_s25 = scalar_lea.sflag (!%p677_p10), [#allocation4], %s746_s5 }
  0x26   : > { %v2675_v1 = vld [vmem:[%s3618_s6 + $0x40] sm:$0xff]   ;;  %s3643_s0 = smov (!%p750_p11, %s2311_s0), 3  ;;  %v2677_v3 = vld [vmem:[%s3618_s6 + $0x48] sm:$0xff]   ;;  %v2679_v5 = vld [vmem:[%s3618_s6 + $0x50] sm:$0xff]  }
  0x27   : > { %v2676_v2 = vld [vmem:[%s3618_s6] sm:$0xff]   ;;  %2437 = vmatprep.subr.bf16.mxu0 %v2675_v1  ;;  %v2678_v4 = vld [vmem:[%s3618_s6 + $0x8] sm:$0xff]   ;;  %s2312_s4 = sshll.u32 %s3643_s0, 3  ;;  %v2680_v7 = vld [vmem:[%s3618_s6 + $0x10] sm:$0xff]   ;;  %s3623_s3 = smov %s3622_s1 }
  0x28   : > { %2438 = vmatpush3.bf16.msra.mxu0 %v2676_v2  ;;  %s753_s23 = scalar_lea.vmem %s3619_s28, %s2312_s4  ;;  %v2681_v9 = vld [vmem:[%s3618_s6 + $0x58] sm:$0xff]   ;;  %v2683_v11 = vld [vmem:[%s3618_s6 + $0x60] sm:$0xff]   ;;  %v2685_v13 = vld [vmem:[%s3618_s6 + $0x68] sm:$0xff]   ;;  %s3621_s28 = sld [smem:[#allocation19_spill]] }
  0x29   : > { %2439 = vmatprep.subr.bf16.mxu0 %v2677_v3  ;;  %v773_v6 = vld [vmem:[%s753_s23] sm:$0xff]  ;;  %v774_v8 = vld [vmem:[%s753_s23 + $0x8] sm:$0xff]  ;;  %v2682_v10 = vld [vmem:[%s3618_s6 + $0x18] sm:$0xff]   ;;  %s3625_s4 = sld [smem:[#allocation18_spill]] }
  0x2a   : > { %779 = vperm.xlu0 %2674, %v773_v6   ;;  %v2684_v12 = vld [vmem:[%s3618_s6 + $0x20] sm:$0xff]   ;;  %v2686_v14 = vld [vmem:[%s3618_s6 + $0x28] sm:$0xff]   ;;  %v2687_v15 = vld [vmem:[%s3618_s6 + $0x70] sm:$0xff]  }
  0x2b   : > { %v2688_v16 = vld [vmem:[%s3618_s6 + $0x30] sm:$0xff]   ;;  %v2689_v17 = vld [vmem:[%s3618_s6 + $0x78] sm:$0xff]   ;;  %v967_v27 = vld [vmem:[%s3620_s7] sm:$0xff] }
  0x2c   : > { %2440 = vmatpush3.bf16.msra.mxu0 %v2678_v4  ;;  %v2690_v18 = vld [vmem:[%s3618_s6 + $0x38] sm:$0xff]   ;;  %v968_v33 = vld [vmem:[%s3620_s7 + $0x8] sm:$0xff]  ;;  %v2692_v36 = vld [vmem:[%s3622_s1] sm:$0xff]   ;;  %s3627_s1 = sld [smem:[#allocation22_spill]] }
  0x2d   : > { %2441 = vmatprep.subr.bf16.mxu0 %v2679_v5  ;;  %v2694_v47 = vld [vmem:[%s3623_s3 + $0x8] sm:$0xff]   ;;  %v2696_v49 = vld [vmem:[%s3623_s3 + $0x10] sm:$0xff]   ;;  %v2698_v51 = vld [vmem:[%s3623_s3 + $0x18] sm:$0xff]  }
  0x2e   : > { %782 = vperm.xlu0 %2674, %v774_v8   ;;  %v2691_v35 = vld [vmem:[%s3621_s28] sm:$0xff]   ;;  %v2693_v38 = vld [vmem:[%s3621_s28 + $0x8] sm:$0xff]   ;;  %v2695_v48 = vld [vmem:[%s3621_s28 + $0x10] sm:$0xff]  }
  0x2f   : > { %2522 = vmatpush3.bf16.msra.mxu1 %v2691_v35  ;;  %v2697_v50 = vld [vmem:[%s3621_s28 + $0x18] sm:$0xff]   ;;  %v2699_v52 = vld [vmem:[%s3621_s28 + $0x20] sm:$0xff]   ;;  %v2701_v54 = vld [vmem:[%s3621_s28 + $0x28] sm:$0xff]  }
  0x30   : > { %2442 = vmatpush3.bf16.msra.mxu0 %v2680_v7  ;;  %2523 = vmatprep.subr.bf16.mxu1 %v2897_v37  ;;  %v2700_v53 = vld [vmem:[%s3623_s3 + $0x20] sm:$0xff]   ;;  %v2702_v55 = vld [vmem:[%s3623_s3 + $0x28] sm:$0xff]   ;;  %v2703_v56 = vld [vmem:[%s3621_s28 + $0x30] sm:$0xff]  }
  0x31   : > { %2443 = vmatprep.subr.bf16.mxu0 %v2681_v9  ;;  %v2704_v57 = vld [vmem:[%s3623_s3 + $0x30] sm:$0xff]   ;;  %v2705_v58 = vld [vmem:[%s3621_s28 + $0x38] sm:$0xff]   ;;  %v2337_v5 = vld [vmem:[%s3624_s24] ss:$0 sm:$0xff]  ;;  %s3626_s24 = sld [smem:[#allocation20_spill]] }
  0x32   : > { %v2706_v59 = vld [vmem:[%s3623_s3 + $0x38] sm:$0xff]   ;;  %v2338_v9 = vld [vmem:[%s3625_s4] ss:$0 sm:$0xff]  ;;  %s2310_s4 = sshll.u32 %s746_s5, 5  ;;  %s2899_s3 = smov [#allocation3]  }
  0x33   : > { %2524 = vmatpush3.bf16.msra.mxu1 %v2693_v38  ;;  %s748_s0 = scalar_lea.vmem [#allocation3], %s2310_s4  ;;  %s2819_s6 = sshll.u32 %s2899_s3, 4  ;;  %s2820_s6 = int_to_ptr.vmem [resolvable:$false] %s2819_s6 }
  0x34   : > { %2444 = vmatpush3.bf16.msra.mxu0 %v2682_v10  ;;  %2525 = vmatprep.subr.bf16.mxu1 %v2897_v37  ;;  %s2203_s22 = sshll.u32 %s748_s0, 4  ;;  %s2821_s7 = scalar_lea.vmem %s2820_s6, 1024  ;;  %s3504_s22 = int_to_ptr.vmem [resolvable:$true] %s2203_s22 }
  0x35   : > { %2445 = vmatprep.subr.bf16.mxu0 %v2683_v11  ;;  %s2815_s4 = scalar_lea.vmem %s3504_s22, 512  ;;  %p2822_p1 = scmp.lt.s32.totalorder %s3504_s22, %s2820_s6 }
  0x36   : > { %p2816_p12 = scmp.ne.s32.totalorder %s3504_s22, %s2815_s4  ;;  %p2823_p2 = scmp.lt.s32.totalorder %s2821_s7, %s2815_s4 }
  0x37   : > { %2526 = vmatpush3.bf16.msra.mxu1 %v2695_v48 }
  0x38   : > { %2446 = vmatpush3.bf16.msra.mxu0 %v2684_v12  ;;  %2527 = vmatprep.subr.bf16.mxu1 %v2897_v37  ;;  %p2817_p13 = pnand %p2816_p12, %p3062_p4  ;;  %p2824_p3 = por %p2823_p2, %p2822_p1 }
  0x39   : > { %2447 = vmatprep.subr.bf16.mxu0 %v2685_v13  ;;  %v2707_v13 = vld [vmem:[%s3566_s9] sm:$0xff]  }
  0x3a   : > { %p2818_p0 = pneg %p2817_p13 }
  0x3b   : > { %2528 = vmatpush3.bf16.msra.mxu1 %v2697_v50 }
  0x3c   : > { %2448 = vmatpush3.bf16.msra.mxu0 %v2686_v14  ;;  %2529 = vmatprep.subr.bf16.mxu1 %v2897_v37  ;;  %p2825_p5 = pnand %p2824_p3, %p2818_p0 }
  0x3d   : > { %2449 = vmatprep.subr.bf16.mxu0 %v2687_v15  ;;  %v2708_v15 = vld [vmem:[%s3566_s9 + $0x8] sm:$0xff]  }
  0x3f   : > { %2530 = vmatpush3.bf16.msra.mxu1 %v2699_v52 }
  0x40   : > { %2450 = vmatpush3.bf16.msra.mxu0 %v2688_v16  ;;  %2531 = vmatprep.subr.bf16.mxu1 %v2897_v37  ;;  %v2709_v16 = vld [vmem:[%s3566_s9 + $0x10] sm:$0xff]  }
  0x41   : > { %2451 = vmatprep.subr.bf16.mxu0 %v2689_v17  ;;  %v2710_v17 = vld [vmem:[%s3566_s9 + $0x18] sm:$0xff]  }
  0x43   : > { %2532 = vmatpush3.bf16.msra.mxu1 %v2701_v54 }
  0x44   : > { %2452 = vmatpush3.bf16.msra.mxu0 %v2690_v18  ;;  %2533 = vmatprep.subr.bf16.mxu1 %v2897_v37  ;;  %v2711_v18 = vld [vmem:[%s3566_s9 + $0x20] sm:$0xff]  }
  0x45   : > { %2541 = vmatprep.subr.bf16.mxu0 %v2897_v37 }
  0x47   : > { %2534 = vmatpush3.bf16.msra.mxu1 %v2703_v56 }
  0x48   : > { %2535 = vmatprep.subr.bf16.mxu1 %v2897_v37 }
  0x4b   : > { %2536 = vmatpush3.bf16.msra.mxu1 %v2705_v58 }
  0x4c   : > { %2561 = vmatprep.subr.bf16.mxu1 %v2897_v37 }
  0xa9   : > { %v780_v21 = vpop.permute.xlu0 %779 }
  0xaa   : > { %vm784_vm0 = vcmp.eq.s32.totalorder %v780_v21, %v776_v20  ;;  %vm785_vm4 = vcmp.eq.s32.totalorder %v780_v21, %v777_v22  ;;  %v2713_v21 = vld [vmem:[%s3566_s9 + $0x30] sm:$0xff]  }
  0xad   : > { %v783_v23 = vpop.permute.xlu0 %782 }
  0xae   : > { %vm786_vm1 = vcmp.eq.s32.totalorder %v783_v23, %v776_v20  ;;  %vm787_vm2 = vcmp.eq.s32.totalorder %v783_v23, %v777_v22  ;;  %v2712_v20 = vld [vmem:[%s3566_s9 + $0x28] sm:$0xff]   ;;  %v2714_v22 = vld [vmem:[%s3566_s9 + $0x38] sm:$0xff]   ;;  %v2339_v23 = vld [vmem:[%s3626_s24] ss:$0 sm:$0xff]  ;;  %s3629_s24 = sld [smem:[#allocation23_spill]] }
  0xaf   : > { %vm2335_vm3 = vmpackc.low %vm786_vm1, %vm784_vm0 }
  0xb0   : > { %vm2333_vm5 = vmpackc.low %vm787_vm2, %vm785_vm4 }
  0xb1   : > { %2334 = vmatprep.mubr.msk.bf16.mxu0 %vm2333_vm5, %v2896_v24 }
  0xb2   : > { %2336 = vmatmul.mubr.msk.bf16.vlgmr.msra.gmra.mrb[0].mxu0 %vm2335_vm3, %v2896_v24 }
  0xb3   : > { %2542 = vmatpush3.bf16.msra.mxu0 %v2692_v36  ;;  %2557 = vmatprep.mubr.msk.bf16.mxu0 %vm2898_vm6, %v2897_v37 }
  0xb4   : > { %2543 = vmatprep.subr.bf16.mxu0 %v2897_v37  ;;  %s3630_s29 = smov %s3629_s24 }
  0xb7   : > { %2544 = vmatpush3.bf16.msra.mxu0 %v2694_v47 }
  0xb8   : > { %2545 = vmatprep.subr.bf16.mxu0 %v2897_v37 }
  0xbb   : > { %2546 = vmatpush3.bf16.msra.mxu0 %v2696_v49 }
  0xbc   : > { %2547 = vmatprep.subr.bf16.mxu0 %v2897_v37 }
  0xbf   : > { %2548 = vmatpush3.bf16.msra.mxu0 %v2698_v51 }
  0xc0   : > { %2549 = vmatprep.subr.bf16.mxu0 %v2897_v37 }
  0xc3   : > { %2550 = vmatpush3.bf16.msra.mxu0 %v2700_v53 }
  0xc4   : > { %2551 = vmatprep.subr.bf16.mxu0 %v2897_v37 }
  0xc7   : > { %2552 = vmatpush3.bf16.msra.mxu0 %v2702_v55 }
  0xc8   : > { %2553 = vmatprep.subr.bf16.mxu0 %v2897_v37 }
  0xcb   : > { %2554 = vmatpush3.bf16.msra.mxu0 %v2704_v57 }
  0xcc   : > { %2555 = vmatprep.subr.bf16.mxu0 %v2897_v37 }
  0xcf   : > { %2556 = vmatpush3.bf16.msra.mxu0 %v2706_v59 }
  0xd0   : > { %2581 = vmatprep.subr.bf16.mxu0 %v2897_v37 }
 0x185   : > { %v2453_v25 = vpop.f32.mrb[0].mxu0 }
 0x186   : > { %v2454_v26 = vpop.f32.mrb[1].mxu0 }
 0x187   : > { %v2455_v28 = vadd.f32 %v2454_v26, %v2453_v25  ;;  %v2456_v29 = vpop.f32.mrb[2].mxu0  ;;  %v2348_v25 = vld [vmem:[%s3565_s8] ss:$0 sm:$0xff] }
 0x188   : > { %v2457_v30 = vpop.f32.mrb[3].mxu0 }
 0x189   : > { %v3134_v31 = vadd.f32 %v2455_v28, %v967_v27  ;;  %v2458_v32 = vadd.f32 %v2457_v30, %v2456_v29 }
 0x18b   : > { %971 = vadd.xlane.f32.xlu1 %v3134_v31  ;;  %v3140_v34 = vadd.f32 %v2458_v32, %v968_v33 }
 0x18f   : > { %973 = vadd.xlane.f32.xlu1 %v3140_v34 }
 0x218   : > { %v972_v39 = vpop.xlane.xlu1 %971 }
 0x219   : > { %v976_v40 = vmul.f32 0.0078125, %v972_v39 }
 0x21b   : > { %v978_v41 = vsub.f32 %v3134_v31, %v976_v40 }
 0x21c   : > { %v974_v42 = vpop.xlane.xlu1 %973 }
 0x21d   : > { %v977_v43 = vmul.f32 0.0078125, %v974_v42  ;;  %v980_v44 = vmul.f32 %v978_v41, %v978_v41  ;;  %v2357_v42 = vld [vmem:[%s3567_s10] ss:$0 sm:$0xff] }
 0x21f   : > { %v979_v45 = vsub.f32 %v3140_v34, %v977_v43  ;;  %982 = vadd.xlane.f32.xlu0 %v980_v44 }
 0x221   : > { %v981_v46 = vmul.f32 %v979_v45, %v979_v45 }
 0x223   : > { %984 = vadd.xlane.f32.xlu1 %v981_v46 }
 0x2ac   : > { %v983_v60 = vpop.xlane.xlu0 %982 }
 0x2ad   : > { %v986_v61 = vmul.f32 0.0078125, %v983_v60 }
 0x2af   : > { %v988_v62 = vadd.f32 1e-05, %v986_v61 }
 0x2b0   : > { %v985_v63 = vpop.xlane.xlu1 %984 }
 0x2b1   : > { %2787 = vrsqrt.f32 %v988_v62  ;;  %v987_v1 = vmul.f32 0.0078125, %v985_v63 }
 0x2b3   : > { %v989_v2 = vadd.f32 1e-05, %v987_v1 }
 0x2b5   : > { %2789 = vrsqrt.f32 %v989_v2 }
 0x2bb   : > { %v2788_v3 = vpop.eup %2787 }
 0x2bc   : > { %v992_v4 = vmul.f32 %v2788_v3, %v978_v41 }
 0x2be   : > { %v1001_v8 = vmul.f32 %v2337_v5, %v992_v4 }
 0x2bf   : > { %v2790_v6 = vpop.eup %2789 }
 0x2c0   : > { %v993_v7 = vmul.f32 %v2790_v6, %v979_v45  ;;  %v1010_v11 = vadd.f32 %v2338_v9, %v1001_v8  ;;  %v2716_v6 = vld [vmem:[%s3568_s11 + $0x8] sm:$0xff]   ;;  %v2718_v8 = vld [vmem:[%s3568_s11 + $0x18] sm:$0xff]  }
 0x2c2   : > { %v1002_v10 = vmul.f32 %v2337_v5, %v993_v7  ;;  %v2715_v5 = vld [vmem:[%s3568_s11] sm:$0xff]   ;;  %v2717_v7 = vld [vmem:[%s3568_s11 + $0x10] sm:$0xff]  }
 0x2c4   : > { %v1011_v12 = vadd.f32 %v2338_v9, %v1002_v10  ;;  %v2719_v9 = vld [vmem:[%s3568_s11 + $0x20] sm:$0xff]   ;;  %v2720_v10 = vld [vmem:[%s3568_s11 + $0x28] sm:$0xff]  }
 0x2c6   : > { %v1012_v14 = vpack.c.bf16 %v1011_v12, %v1010_v11  ;;  %v2721_v11 = vld [vmem:[%s3568_s11 + $0x30] sm:$0xff]  }
 0x2c8   : > { %2538 = vmatmul.mubr.bf16.vlgmr.msra.gmra.mrb[0].mxu1 %v1012_v14  ;;  %2558 = vmatmul.mubr.bf16.vlgmr.msra.gmra.mrb[4].mxu0 %v1012_v14 }
 0x2c9   : > { %2562 = vmatpush3.bf16.msra.mxu1 %v2707_v13  ;;  %2577 = vmatprep.mubr.msk.bf16.mxu1 %vm2898_vm6, %v2897_v37 }
 0x2ca   : > { %2563 = vmatprep.subr.bf16.mxu1 %v2897_v37  ;;  %2583 = vmatprep.mubr.msk.bf16.mxu0 %vm2898_vm6, %v2897_v37 }
 0x2cd   : > { %2564 = vmatpush3.bf16.msra.mxu1 %v2708_v15 }
 0x2ce   : > { %2565 = vmatprep.subr.bf16.mxu1 %v2897_v37 }
 0x2d1   : > { %2566 = vmatpush3.bf16.msra.mxu1 %v2709_v16 }
 0x2d2   : > { %2567 = vmatprep.subr.bf16.mxu1 %v2897_v37 }
 0x2d5   : > { %2568 = vmatpush3.bf16.msra.mxu1 %v2710_v17 }
 0x2d6   : > { %2569 = vmatprep.subr.bf16.mxu1 %v2897_v37 }
 0x2d9   : > { %2570 = vmatpush3.bf16.msra.mxu1 %v2711_v18 }
 0x2da   : > { %2571 = vmatprep.subr.bf16.mxu1 %v2897_v37 }
 0x2dd   : > { %2572 = vmatpush3.bf16.msra.mxu1 %v2712_v20  ;;  %v2722_v20 = vld [vmem:[%s3568_s11 + $0x38] sm:$0xff]  }
 0x2de   : > { %2573 = vmatprep.subr.bf16.mxu1 %v2897_v37 }
 0x2e1   : > { %2574 = vmatpush3.bf16.msra.mxu1 %v2713_v21 }
 0x2e2   : > { %2575 = vmatprep.subr.bf16.mxu1 %v2897_v37 }
 0x2e5   : > { %2576 = vmatpush3.bf16.msra.mxu1 %v2714_v22 }
 0x2e6   : > { %2587 = vmatprep.subr.bf16.mxu1 %v2897_v37 }
 0x2e8   : > { %2578 = vmatmul.mubr.bf16.vlgmr.msra.gmra.mrb[4].mxu1 %v1012_v14 }
 0x2e9   : > { %2589 = vmatprep.mubr.msk.bf16.mxu1 %vm2898_vm6, %v2897_v37 }
 0x39b   : > { %v1118_v24 = vpop.f32.mrb[0].mxu1  ;;  %v1231_v26 = vpop.f32.mrb[4].mxu0 }
 0x39c   : > { %v2539_v27 = vpop.f32.mrb[1].mxu1  ;;  %v2559_v28 = vpop.f32.mrb[5].mxu0  ;;  %v1119_v32 = vadd.f32 %v2339_v23, %v1118_v24  ;;  %v1232_v33 = vadd.f32 %v2348_v25, %v1231_v26 }
 0x39d   : > { %v1121_v29 = vpop.f32.mrb[2].mxu1  ;;  %v1234_v30 = vpop.f32.mrb[6].mxu0 }
 0x39e   : > { %v1122_v35 = vadd.f32 %v2339_v23, %v1121_v29  ;;  %v1235_v36 = vadd.f32 %v2348_v25, %v1234_v30  ;;  %v2540_v38 = vpop.f32.mrb[3].mxu1  ;;  %v2560_v39 = vpop.f32.mrb[7].mxu0  ;;  %v2367_v25 = vld [vmem:[%s3569_s12] ss:$0 sm:$0xff] }
 0x39f   : > { %v2725_v38 = vld [vmem:[%s3572_s15 + $0x4] ss:$8 sps:$4 sm:$0xff]  }
 0x3a0   : > { %v1125_v40 = vpack.c.bf16 %v1122_v35, %v1119_v32  ;;  %v1238_v41 = vpack.c.bf16 %v1235_v36, %v1232_v33  ;;  %v2723_v36 = vld [vmem:[%s3572_s15] ss:$8 sps:$4 sm:$0xff]  }
 0x3a2   : > { %2582 = vmatpush3.bf16.xpose.msra.mxu0 %v1238_v41 }
 0x3a3   : > { %2593 = vmatprep.subr.bf16.mxu0 %v2897_v37 }
 0x3a9   : > { %2584 = vmatmul.mubr.bf16.vlgmr.msra.gmra.mrb[8].mxu0 %v1125_v40 }
 0x3aa   : > { %2609 = vmatprep.mubr.msk.bf16.mxu0 %vm2898_vm6, %v2897_v37  ;;  %2594 = vmatpush3.bf16.msra.mxu0 %v2715_v5 }
 0x3ab   : > { %2595 = vmatprep.subr.bf16.mxu0 %v2897_v37 }
 0x3ae   : > { %2596 = vmatpush3.bf16.msra.mxu0 %v2716_v6 }
 0x3af   : > { %2597 = vmatprep.subr.bf16.mxu0 %v2897_v37 }
 0x3b2   : > { %2598 = vmatpush3.bf16.msra.mxu0 %v2717_v7 }
 0x3b3   : > { %2599 = vmatprep.subr.bf16.mxu0 %v2897_v37 }
 0x3b6   : > { %2600 = vmatpush3.bf16.msra.mxu0 %v2718_v8  ;;  %v2377_v8 = vld [vmem:[%s3571_s14] ss:$0 sm:$0xff] }
 0x3b7   : > { %2601 = vmatprep.subr.bf16.mxu0 %v2897_v37 }
 0x3ba   : > { %2602 = vmatpush3.bf16.msra.mxu0 %v2719_v9 }
 0x3bb   : > { %v1344_v43 = vpop.f32.mrb[4].mxu1  ;;  %2603 = vmatprep.subr.bf16.mxu0 %v2897_v37 }
 0x3bc   : > { %v2579_v44 = vpop.f32.mrb[5].mxu1  ;;  %v1345_v46 = vadd.f32 %v2357_v42, %v1344_v43 }
 0x3bd   : > { %v1347_v45 = vpop.f32.mrb[6].mxu1 }
 0x3be   : > { %v1348_v47 = vadd.f32 %v2357_v42, %v1347_v45  ;;  %v2580_v48 = vpop.f32.mrb[7].mxu1  ;;  %2604 = vmatpush3.bf16.msra.mxu0 %v2720_v10 }
 0x3bf   : > { %2605 = vmatprep.subr.bf16.mxu0 %v2897_v37  ;;  %v2729_v48 = vld [vmem:[%s3572_s15 + $0x20] ss:$8 sps:$4 sm:$0xff]  }
 0x3c0   : > { %v1351_v49 = vpack.c.bf16 %v1348_v47, %v1345_v46  ;;  %v2731_v47 = vld [vmem:[%s3572_s15 + $0x24] ss:$8 sps:$4 sm:$0xff]  }
 0x3c2   : > { %2588 = vmatpush3.bf16.msra.mxu1 %v1351_v49  ;;  %2606 = vmatpush3.bf16.msra.mxu0 %v2721_v11  ;;  %v2734_v49 = vld [vmem:[%s3572_s15 + $0x34] ss:$8 sps:$4 sm:$0xff]  }
 0x3c3   : > { %2607 = vmatprep.subr.bf16.mxu0 %v2897_v37  ;;  %1727 = vmatprep.subr.bf16.mxu1 %v2725_v38 }
 0x3c6   : > { %2608 = vmatpush3.bf16.msra.mxu0 %v2722_v20  ;;  %v2754_v20 = vld [vmem:[%s3574_s17 + $0x18] sm:$0xff]  }
 0x47c   : > { %v1386_v50 = vpop.f32.mrb[8].mxu0 }
 0x47d   : > { %v1393_v51 = vmul.f32 0.088388346, %v1386_v50  ;;  %v2585_v52 = vpop.f32.mrb[9].mxu0  ;;  %v2732_v50 = vld [vmem:[%s3572_s15 + $0x30] ss:$8 sps:$4 sm:$0xff]  }
 0x47e   : > { %v1389_v53 = vpop.f32.mrb[10].mxu0  ;;  %v2735_v52 = vld [vmem:[%s3572_s15 + $0x40] ss:$8 sps:$4 sm:$0xff]  }
 0x47f   : > { %v1394_v54 = vmul.f32 0.088388346, %v1389_v53  ;;  %v2586_v55 = vpop.f32.mrb[11].mxu0  ;;  %v1396_v56 = vsel %vm1395_vm7, %v1393_v51, -inf  ;;  %v2740_v53 = vld [vmem:[%s3572_s15 + $0x54] ss:$8 sps:$4 sm:$0xff]  }
 0x480   : > { %1397 = vmax.xlane.f32.xlu1 %v1396_v56  ;;  %v2743_v55 = vld [vmem:[%s3572_s15 + $0x64] ss:$8 sps:$4 sm:$0xff]   ;;  %v2741_v56 = vld [vmem:[%s3572_s15 + $0x60] ss:$8 sps:$4 sm:$0xff]  }
 0x481   : > { %v1399_v57 = vsel %vm1395_vm7, %v1394_v54, -inf }
 0x484   : > { %1400 = vmax.xlane.f32.xlu1 %v1399_v57  ;;  %v2746_v57 = vld [vmem:[%s3572_s15 + $0x74] ss:$8 sps:$4 sm:$0xff]  }
 0x50d   : > { %v1398_v58 = vpop.xlane.xlu1 %1397 }
 0x50e   : > { %v1402_v59 = vsub.f32 %v1393_v51, %v1398_v58  ;;  %v2737_v51 = vld [vmem:[%s3572_s15 + $0x44] ss:$8 sps:$4 sm:$0xff]   ;;  %v2744_v58 = vld [vmem:[%s3572_s15 + $0x70] ss:$8 sps:$4 sm:$0xff]  }
 0x510   : > { %v1404_v60 = vmul.f32 1.442695, %v1402_v59 }
 0x511   : > { %v1401_v61 = vpop.xlane.xlu1 %1400 }
 0x512   : > { %2791 = vpow2.f32 %v1404_v60  ;;  %v1403_v62 = vsub.f32 %v1394_v54, %v1401_v61  ;;  %v2738_v54 = vld [vmem:[%s3572_s15 + $0x50] ss:$8 sps:$4 sm:$0xff]  }
 0x514   : > { %v1406_v63 = vmul.f32 1.442695, %v1403_v62 }
 0x516   : > { %2793 = vpow2.f32 %v1406_v63 }
 0x51c   : > { %v2792_v1 = vpop.eup %2791 }
 0x51d   : > { %v1408_v2 = vsel %vm1395_vm7, %v2792_v1, 0.0 }
 0x51e   : > { %1409 = vadd.xlane.f32.xlu1 %v1408_v2 }
 0x520   : > { %v2794_v3 = vpop.eup %2793 }
 0x521   : > { %v1411_v4 = vsel %vm1395_vm7, %v2794_v3, 0.0 }
 0x522   : > { %1412 = vadd.xlane.f32.xlu1 %v1411_v4  ;;  %v2376_v4 = vld [vmem:[%s3570_s13] ss:$0 sm:$0xff] }
 0x5ab   : > { %v1410_v12 = vpop.xlane.xlu1 %1409 }
 0x5ac   : > { %2795 = vrcp.f32 %v1410_v12 }
 0x5af   : > { %v1413_v13 = vpop.xlane.xlu1 %1412 }
 0x5b0   : > { %2797 = vrcp.f32 %v1413_v13  ;;  %v2747_v13 = vld [vmem:[%s3574_s17 + $0x40] sm:$0xff]  }
 0x5b1   : > { %2499 = vmatprep.subr.bf16.mxu0 %v2747_v13 }
 0x5b6   : > { %v2796_v14 = vpop.eup %2795 }
 0x5b7   : > { %v1416_v16 = vmul.f32 %v2796_v14, %v2792_v1  ;;  %v2748_v14 = vld [vmem:[%s3574_s17] sm:$0xff]  }
 0x5ba   : > { %v2798_v15 = vpop.eup %2797 }
 0x5bb   : > { %v1417_v17 = vmul.f32 %v2798_v15, %v2794_v3  ;;  %v2749_v15 = vld [vmem:[%s3574_s17 + $0x48] sm:$0xff]  }
 0x5bd   : > { %v1418_v18 = vpack.c.bf16 %v1417_v17, %v1416_v16  ;;  %v2750_v16 = vld [vmem:[%s3574_s17 + $0x8] sm:$0xff]   ;;  %v2752_v17 = vld [vmem:[%s3574_s17 + $0x10] sm:$0xff]  }
 0x5bf   : > { %2590 = vmatmul.mubr.msk.bf16.vlgmr.msra.gmra.mrb[8].mxu1 %vm1395_vm7, %v1418_v18  ;;  %v2753_v18 = vld [vmem:[%s3574_s17 + $0x58] sm:$0xff]  }
 0x5c0   : > { %1759 = vmatprep.mubr.bf16.mxu1 %v2895_v0  ;;  %1728 = vmatpush1.bf16.msra.mxu1 %v2723_v36 }
 0x692   : > { %v1456_v21 = vpop.f32.mrb[8].mxu1 }
 0x693   : > { %v2591_v37 = vpop.f32.mrb[9].mxu1 }
 0x694   : > { %v1459_v22 = vpop.f32.mrb[10].mxu1  ;;  %v2756_v37 = vld [vmem:[%s3574_s17 + $0x20] sm:$0xff]  }
 0x695   : > { %v1463_v23 = vpack.c.bf16 %v1459_v22, %v1456_v21  ;;  %v2592_v24 = vpop.f32.mrb[11].mxu1  ;;  %v2755_v21 = vld [vmem:[%s3574_s17 + $0x60] sm:$0xff]   ;;  %v2757_v22 = vld [vmem:[%s3574_s17 + $0x68] sm:$0xff]  }
 0x696   : > { %v2759_v24 = vld [vmem:[%s3574_s17 + $0x70] sm:$0xff]  }
 0x697   : > { %2610 = vmatmul.mubr.bf16.vlgmr.msra.gmra.mrb[12].mxu0 %v1463_v23  ;;  %v2758_v23 = vld [vmem:[%s3574_s17 + $0x28] sm:$0xff]  }
 0x698   : > { %2500 = vmatpush3.bf16.msra.mxu0 %v2748_v14 }
 0x699   : > { %2501 = vmatprep.subr.bf16.mxu0 %v2749_v15 }
 0x69c   : > { %2502 = vmatpush3.bf16.msra.mxu0 %v2750_v16 }
 0x76a   : > { %v1569_v26 = vpop.f32.mrb[12].mxu0 }
 0x76b   : > { %v1570_v27 = vadd.f32 %v2367_v25, %v1569_v26  ;;  %v2611_v28 = vpop.f32.mrb[13].mxu0  ;;  %v2761_v26 = vld [vmem:[%s3574_s17 + $0x78] sm:$0xff]  }
 0x76c   : > { %v1572_v29 = vpop.f32.mrb[14].mxu0  ;;  %v3425_v28 = vshrl.u32 %v775_v19, 7 }
 0x76d   : > { %v3312_v30 = vadd.f32 %v1570_v27, %v3134_v31  ;;  %v1573_v32 = vadd.f32 %v2367_v25, %v1572_v29  ;;  %v2612_v33 = vpop.f32.mrb[15].mxu0  ;;  %v2728_v31 = vld [vmem:[%s3572_s15 + $0x14] ss:$8 sps:$4 sm:$0xff]  }
 0x76e   : > { %1729 = vmatprep.subr.bf16.mxu1 %v2728_v31  ;;  %v2760_v25 = vld [vmem:[%s3574_s17 + $0x30] sm:$0xff]   ;;  %v2762_v27 = vld [vmem:[%s3574_s17 + $0x38] sm:$0xff]   ;;  %v1639_v29 = vsub.s32 0, %v3425_v28  ;;  %v1643_v33 = vsub.s32 1, %v3425_v28 }
 0x76f   : > { %1578 = vadd.xlane.f32.xlu1 %v3312_v30  ;;  %v3316_v35 = vadd.f32 %v1573_v32, %v3140_v34  ;;  %v2726_v34 = vld [vmem:[%s3572_s15 + $0x10] ss:$8 sps:$4 sm:$0xff]   ;;  %v1635_v32 = vld [vmem:[%s3573_s16] sm:$0x3] }
 0x770   : > { %1730 = vmatpush1.bf16.msra.mxu1 %v2726_v34  ;;  %v1640_v36 = vrot.slane %v1635_v32, %v1639_v29  ;;  %v1644_v38 = vrot.slane %v1635_v32, %v1643_v33 }
 0x771   : > { %1731 = vmatprep.subr.bf16.mxu1 %v2731_v47 }
 0x773   : > { %1580 = vadd.xlane.f32.xlu1 %v3316_v35 }
 0x774   : > { %1732 = vmatpush1.bf16.msra.mxu1 %v2729_v48 }
 0x775   : > { %1733 = vmatprep.subr.bf16.mxu1 %v2734_v49 }
 0x778   : > { %1734 = vmatpush1.bf16.msra.mxu1 %v2732_v50 }
 0x779   : > { %1735 = vmatprep.subr.bf16.mxu1 %v2737_v51 }
 0x77c   : > { %1736 = vmatpush1.bf16.msra.mxu1 %v2735_v52 }
 0x77d   : > { %1737 = vmatprep.subr.bf16.mxu1 %v2740_v53 }
 0x780   : > { %1738 = vmatpush1.bf16.msra.mxu1 %v2738_v54 }
 0x781   : > { %1739 = vmatprep.subr.bf16.mxu1 %v2743_v55 }
 0x784   : > { %1740 = vmatpush1.bf16.msra.mxu1 %v2741_v56 }
 0x785   : > { %1741 = vmatprep.subr.bf16.mxu1 %v2746_v57 }
 0x788   : > { %1742 = vmatpush1.bf16.msra.mxu1 %v2744_v58 }
 0x7fc   : > { %v1579_v39 = vpop.xlane.xlu1 %1578 }
 0x7fd   : > { %v1582_v40 = vmul.f32 0.0078125, %v1579_v39 }
 0x7ff   : > { %v1584_v41 = vsub.f32 %v3312_v30, %v1582_v40 }
 0x800   : > { %v1581_v42 = vpop.xlane.xlu1 %1580 }
 0x801   : > { %v1583_v43 = vmul.f32 0.0078125, %v1581_v42  ;;  %v1586_v44 = vmul.f32 %v1584_v41, %v1584_v41 }
 0x803   : > { %v1585_v45 = vsub.f32 %v3316_v35, %v1583_v43  ;;  %1588 = vadd.xlane.f32.xlu1 %v1586_v44 }
 0x805   : > { %v1587_v46 = vmul.f32 %v1585_v45, %v1585_v45 }
 0x807   : > { %1590 = vadd.xlane.f32.xlu0 %v1587_v46 }
 0x890   : > { %v1589_v59 = vpop.xlane.xlu1 %1588 }
 0x891   : > { %v1592_v60 = vmul.f32 0.0078125, %v1589_v59 }
 0x893   : > { %v1594_v61 = vadd.f32 1e-05, %v1592_v60 }
 0x894   : > { %v1591_v62 = vpop.xlane.xlu0 %1590 }
 0x895   : > { %2799 = vrsqrt.f32 %v1594_v61  ;;  %v1593_v63 = vmul.f32 0.0078125, %v1591_v62 }
 0x897   : > { %v1595_v1 = vadd.f32 1e-05, %v1593_v63 }
 0x899   : > { %2801 = vrsqrt.f32 %v1595_v1 }
 0x89f   : > { %v2800_v2 = vpop.eup %2799 }
 0x8a0   : > { %v1598_v3 = vmul.f32 %v2800_v2, %v1584_v41 }
 0x8a2   : > { %v1607_v7 = vmul.f32 %v2376_v4, %v1598_v3 }
 0x8a3   : > { %v2802_v5 = vpop.eup %2801 }
 0x8a4   : > { %v1599_v6 = vmul.f32 %v2802_v5, %v1585_v45  ;;  %v1616_v10 = vadd.f32 %v2377_v8, %v1607_v7 }
 0x8a6   : > { %v1608_v9 = vmul.f32 %v2376_v4, %v1599_v6 }
 0x8a8   : > { %v1617_v11 = vadd.f32 %v2377_v8, %v1608_v9 }
 0x8aa   : > { %v1618_v12 = vpack.c.bf16 %v1617_v11, %v1616_v10 }
 0x8ac   : > { %1760 = vmatmul.mubr.bf16.vlgmr.msra.gmra.mrb[12].mxu1 %v1618_v12 }
 0x8ad   : > { %2171 = vmatprep.mubr.bf16.mxu1 %v2895_v0  ;;  %v2751_v0 = vld [vmem:[%s3574_s17 + $0x50] sm:$0xff]  }
 0x8ae   : > { %2503 = vmatprep.subr.bf16.mxu0 %v2751_v0 }
 0x8af   : > { %2504 = vmatpush3.bf16.msra.mxu0 %v2752_v17 }
 0x8b0   : > { %2505 = vmatprep.subr.bf16.mxu0 %v2753_v18 }
 0x8b3   : > { %2506 = vmatpush3.bf16.msra.mxu0 %v2754_v20  ;;  %v2394_v20 = vld [vmem:[%s3575_s18] ss:$0 sm:$0xff] }
 0x8b4   : > { %2507 = vmatprep.subr.bf16.mxu0 %v2755_v21 }
 0x8b7   : > { %2508 = vmatpush3.bf16.msra.mxu0 %v2756_v37 }
 0x8b8   : > { %2509 = vmatprep.subr.bf16.mxu0 %v2757_v22 }
 0x8bb   : > { %2510 = vmatpush3.bf16.msra.mxu0 %v2758_v23 }
 0x8bc   : > { %2511 = vmatprep.subr.bf16.mxu0 %v2759_v24 }
 0x8bf   : > { %2512 = vmatpush3.bf16.msra.mxu0 %v2760_v25 }
 0x8c0   : > { %2513 = vmatprep.subr.bf16.mxu0 %v2761_v26 }
 0x8c3   : > { %2514 = vmatpush3.bf16.msra.mxu0 %v2762_v27 }
 0x97f   : > { %v1761_v31 = vpop.f32.mrb[12].mxu1 }
 0x980   : > { %v1762_v34 = vadd.f32 %v1761_v31, %v1640_v36  ;;  %v1763_v39 = vpop.f32.mrb[13].mxu1  ;;  %v2768_v31 = vld [vmem:[%s3578_s21 + $0x14] ss:$8 sps:$4 sm:$0xff]  }
 0x981   : > { %v1764_v40 = vadd.f32 %v1763_v39, %v1644_v38  ;;  %v1765_v19 = vpop.f32.mrb[14].mxu1 }
 0x982   : > { %v1774_v41 = vmul.f32 0.044715, %v1762_v34  ;;  %v1766_v42 = vadd.f32 %v1765_v19, %v1640_v36  ;;  %v1767_v43 = vpop.f32.mrb[15].mxu1  ;;  %v1770_v7 = vmul.f32 0.5, %v1762_v34  ;;  %v2763_v36 = vld [vmem:[%s3578_s21] ss:$8 sps:$4 sm:$0xff]  }
 0x983   : > { %v1775_v44 = vmul.f32 0.044715, %v1764_v40  ;;  %v1768_v45 = vadd.f32 %v1767_v43, %v1644_v38  ;;  %v1771_v10 = vmul.f32 0.5, %v1764_v40  ;;  %v2765_v38 = vld [vmem:[%s3578_s21 + $0x4] ss:$8 sps:$4 sm:$0xff]  }
 0x984   : > { %v1778_v46 = vmul.f32 %v1774_v41, %v1762_v34  ;;  %v1776_v47 = vmul.f32 0.044715, %v1766_v42  ;;  %v1772_v8 = vmul.f32 0.5, %v1766_v42  ;;  %2139 = vmatprep.subr.bf16.mxu1 %v2765_v38 }
 0x985   : > { %v1779_v48 = vmul.f32 %v1775_v44, %v1764_v40  ;;  %v1777_v49 = vmul.f32 0.044715, %v1768_v45  ;;  %v1773_v11 = vmul.f32 0.5, %v1768_v45  ;;  %2140 = vmatpush1.bf16.msra.mxu1 %v2763_v36  ;;  %v2771_v44 = vld [vmem:[%s3578_s21 + $0x24] ss:$8 sps:$4 sm:$0xff]  }
 0x986   : > { %v1782_v50 = vmul.f32 %v1778_v46, %v1762_v34  ;;  %v1780_v51 = vmul.f32 %v1776_v47, %v1766_v42  ;;  %2141 = vmatprep.subr.bf16.mxu1 %v2768_v31  ;;  %v2774_v46 = vld [vmem:[%s3578_s21 + $0x34] ss:$8 sps:$4 sm:$0xff]   ;;  %v2772_v47 = vld [vmem:[%s3578_s21 + $0x30] ss:$8 sps:$4 sm:$0xff]  }
 0x987   : > { %v1783_v52 = vmul.f32 %v1779_v48, %v1764_v40  ;;  %v1781_v53 = vmul.f32 %v1777_v49, %v1768_v45  ;;  %v2777_v48 = vld [vmem:[%s3578_s21 + $0x44] ss:$8 sps:$4 sm:$0xff]   ;;  %v2775_v49 = vld [vmem:[%s3578_s21 + $0x40] ss:$8 sps:$4 sm:$0xff]  }
 0x988   : > { %v1786_v54 = vadd.f32 %v1782_v50, %v1762_v34  ;;  %v1784_v55 = vmul.f32 %v1780_v51, %v1766_v42  ;;  %v2780_v50 = vld [vmem:[%s3578_s21 + $0x54] ss:$8 sps:$4 sm:$0xff]   ;;  %v2778_v51 = vld [vmem:[%s3578_s21 + $0x50] ss:$8 sps:$4 sm:$0xff]  }
 0x989   : > { %v1785_v56 = vmul.f32 %v1781_v53, %v1768_v45  ;;  %v1787_v57 = vadd.f32 %v1783_v52, %v1764_v40  ;;  %v2783_v52 = vld [vmem:[%s3578_s21 + $0x64] ss:$8 sps:$4 sm:$0xff]   ;;  %v2781_v53 = vld [vmem:[%s3578_s21 + $0x60] ss:$8 sps:$4 sm:$0xff]  }
 0x98a   : > { %v1790_v58 = vmul.f32 0.7978846, %v1786_v54  ;;  %v1788_v59 = vadd.f32 %v1784_v55, %v1766_v42  ;;  %v2786_v54 = vld [vmem:[%s3578_s21 + $0x74] ss:$8 sps:$4 sm:$0xff]   ;;  %v2784_v55 = vld [vmem:[%s3578_s21 + $0x70] ss:$8 sps:$4 sm:$0xff]  }
 0x98b   : > { %v1789_v60 = vadd.f32 %v1785_v56, %v1768_v45  ;;  %v1791_v61 = vmul.f32 0.7978846, %v1787_v57  ;;  %v2769_v45 = vld [vmem:[%s3578_s21 + $0x20] ss:$8 sps:$4 sm:$0xff]  }
 0x98c   : > { %2803 = vtanh.f32 %v1790_v58  ;;  %v1792_v62 = vmul.f32 0.7978846, %v1788_v59 }
 0x98d   : > { %v1793_v63 = vmul.f32 0.7978846, %v1789_v60  ;;  %2805 = vtanh.f32 %v1791_v61 }
 0x98e   : > { %2807 = vtanh.f32 %v1792_v62 }
 0x98f   : > { %2809 = vtanh.f32 %v1793_v63  ;;  %v2411_v63 = vld [vmem:[%s3576_s19] ss:$0 sm:$0xff] }
 0x996   : > { %v2804_v1 = vpop.eup %2803 }
 0x997   : > { %v2806_v2 = vpop.eup %2805  ;;  %v1798_v3 = vadd.f32 1.0, %v2804_v1 }
 0x998   : > { %v2808_v4 = vpop.eup %2807  ;;  %v1799_v5 = vadd.f32 1.0, %v2806_v2 }
 0x999   : > { %v2810_v6 = vpop.eup %2809  ;;  %v1800_v9 = vadd.f32 1.0, %v2808_v4  ;;  %v1802_v13 = vmul.f32 %v1798_v3, %v1770_v7 }
 0x99a   : > { %v1801_v12 = vadd.f32 1.0, %v2810_v6  ;;  %v1803_v15 = vmul.f32 %v1799_v5, %v1771_v10  ;;  %v2412_v5 = vld [vmem:[%s3577_s20] ss:$0 sm:$0xff] }
 0x99b   : > { %v1804_v14 = vmul.f32 %v1800_v9, %v1772_v8  ;;  %v2047_v10 = vld [vmem:[%s3627_s1] sm:$0x3]  ;;  %s3509_s1 = scalar_lea.hbm %s3629_s24, %s2436_s27 }
 0x99c   : > { %v1805_v16 = vmul.f32 %v1801_v12, %v1773_v11  ;;  %v2052_v11 = vrot.slane %v2047_v10, %v1639_v29  ;;  %v2056_v12 = vrot.slane %v2047_v10, %v1643_v33 }
 0x99d   : > { %v1806_v0 = vpack.c.bf16 %v1804_v14, %v1802_v13 }
 0x99e   : > { %v1807_v17 = vpack.c.bf16 %v1805_v16, %v1803_v15 }
 0x9a0   : > { %1975 = vmatprep.mubr.bf16.mxu0 %v1807_v17 }
 0x9a1   : > { %1976 = vmatmul.mubr.bf16.vlgmr.msra.gmra.mrb[16].mxu0 %v1806_v0 }
 0xa74   : > { %v2515_v18 = vpop.f32.mrb[16].mxu0 }
 0xa75   : > { %v2516_v21 = vpop.f32.mrb[17].mxu0 }
 0xa76   : > { %v2517_v37 = vadd.f32 %v2516_v21, %v2515_v18  ;;  %v2518_v22 = vpop.f32.mrb[18].mxu0 }
 0xa77   : > { %v2519_v23 = vpop.f32.mrb[19].mxu0 }
 0xa78   : > { %v1978_v24 = vadd.f32 %v2517_v37, %v2394_v20  ;;  %v2520_v25 = vadd.f32 %v2519_v23, %v2518_v22 }
 0xa7a   : > { %v1981_v26 = vadd.f32 %v2520_v25, %v2394_v20  ;;  %v1984_v27 = vadd.f32 %v1978_v24, %v3312_v30  ;;  %v2766_v30 = vld [vmem:[%s3578_s21 + $0x10] ss:$8 sps:$4 sm:$0xff]  }
 0xa7b   : > { %2142 = vmatpush1.bf16.msra.mxu1 %v2766_v30 }
 0xa7c   : > { %1986 = vadd.xlane.f32.xlu1 %v1984_v27  ;;  %v1985_v32 = vadd.f32 %v1981_v26, %v3316_v35  ;;  %2143 = vmatprep.subr.bf16.mxu1 %v2771_v44 }
 0xa7e   : > { %1988 = vadd.xlane.f32.xlu0 %v1985_v32 }
 0xa7f   : > { %2144 = vmatpush1.bf16.msra.mxu1 %v2769_v45 }
 0xa80   : > { %2145 = vmatprep.subr.bf16.mxu1 %v2774_v46 }
 0xa83   : > { %2146 = vmatpush1.bf16.msra.mxu1 %v2772_v47 }
 0xa84   : > { %2147 = vmatprep.subr.bf16.mxu1 %v2777_v48 }
 0xa87   : > { %2148 = vmatpush1.bf16.msra.mxu1 %v2775_v49 }
 0xa88   : > { %2149 = vmatprep.subr.bf16.mxu1 %v2780_v50 }
 0xa8b   : > { %2150 = vmatpush1.bf16.msra.mxu1 %v2778_v51 }
 0xa8c   : > { %2151 = vmatprep.subr.bf16.mxu1 %v2783_v52 }
 0xa8f   : > { %2152 = vmatpush1.bf16.msra.mxu1 %v2781_v53 }
 0xa90   : > { %2153 = vmatprep.subr.bf16.mxu1 %v2786_v54 }
 0xa93   : > { %2154 = vmatpush1.bf16.msra.mxu1 %v2784_v55 }
 0xb09   : > { %v1987_v35 = vpop.xlane.xlu1 %1986 }
 0xb0a   : > { %v1990_v34 = vmul.f32 0.0078125, %v1987_v35 }
 0xb0b   : > { %v1989_v39 = vpop.xlane.xlu0 %1988 }
 0xb0c   : > { %v1992_v40 = vsub.f32 %v1984_v27, %v1990_v34  ;;  %v1991_v19 = vmul.f32 0.0078125, %v1989_v39 }
 0xb0e   : > { %v1993_v41 = vsub.f32 %v1985_v32, %v1991_v19  ;;  %v1994_v42 = vmul.f32 %v1992_v40, %v1992_v40 }
 0xb10   : > { %1996 = vadd.xlane.f32.xlu1 %v1994_v42  ;;  %v1995_v43 = vmul.f32 %v1993_v41, %v1993_v41 }
 0xb12   : > { %1998 = vadd.xlane.f32.xlu0 %v1995_v43 }
 0xb9d   : > { %v1997_v56 = vpop.xlane.xlu1 %1996 }
 0xb9e   : > { %v2000_v57 = vmul.f32 0.0078125, %v1997_v56 }
 0xb9f   : > { %v1999_v58 = vpop.xlane.xlu0 %1998 }
 0xba0   : > { %v2002_v59 = vadd.f32 1e-05, %v2000_v57  ;;  %v2001_v60 = vmul.f32 0.0078125, %v1999_v58 }
 0xba2   : > { %2811 = vrsqrt.f32 %v2002_v59  ;;  %v2003_v61 = vadd.f32 1e-05, %v2001_v60 }
 0xba4   : > { %2813 = vrsqrt.f32 %v2003_v61 }
 0xbac   : > { %v2812_v62 = vpop.eup %2811 }
 0xbad   : > { %v2006_v1 = vmul.f32 %v2812_v62, %v1992_v40 }
 0xbae   : > { %v2814_v2 = vpop.eup %2813 }
 0xbaf   : > { %v2007_v3 = vmul.f32 %v2814_v2, %v1993_v41  ;;  %v2015_v4 = vmul.f32 %v2411_v63, %v2006_v1 }
 0xbb1   : > { %v2016_v6 = vmul.f32 %v2411_v63, %v2007_v3  ;;  %v2024_v7 = vadd.f32 %v2412_v5, %v2015_v4 }
 0xbb3   : > { %v2025_v8 = vadd.f32 %v2412_v5, %v2016_v6 }
 0xbb5   : > { %v2030_v9 = vpack.c.bf16 %v2025_v8, %v2024_v7 }
 0xbb7   : > { %2172 = vmatmul.mubr.bf16.vlgmr.msra.gmra.mrb[16].mxu1 %v2030_v9 }
 0xc8a   : > { %v2173_v13 = vpop.f32.mrb[16].mxu1 }
 0xc8b   : > { %v2174_v14 = vadd.f32 %v2173_v13, %v2052_v11  ;;  %v2175_v15 = vpop.f32.mrb[17].mxu1 }
 0xc8c   : > { %v2176_v16 = vadd.f32 %v2175_v15, %v2056_v12  ;;  %v2177_v0 = vpop.f32.mrb[18].mxu1 }
 0xc8d   : > { %2182 = vst [vmem:[%s748_s0] sm:$0xff] %v2174_v14  ;;  %v2178_v17 = vadd.f32 %v2177_v0, %v2052_v11  ;;  %v2179_v29 = vpop.f32.mrb[19].mxu1 }
 0xc8e   : > { %2183 = vst [vmem:[%s748_s0 + $0x8] sm:$0xff] %v2176_v16  ;;  %v2180_v28 = vadd.f32 %v2179_v29, %v2056_v12 }
 0xc8f   : > { %2184 = vst [vmem:[%s748_s0 + $0x10] sm:$0xff] %v2178_v17 }
 0xc90   : > { %2185 = vst [vmem:[%s748_s0 + $0x18] sm:$0xff] %v2180_v28 }
 0xc91   : > { %2828 = shalt.err (!%p2825_p5)
}
 0xc92   : > { %s2829_s5 = scalar_lea.hbm %s3509_s1, 512  ;;  %s2833_s3 = scalar_lea.hbm %s3630_s29, 1024 }
 0xc93   : > { %p2830_p6 = scmp.ne.s32.totalorder %s3509_s1, %s2829_s5  ;;  %p2834_p10 = scmp.lt.u32.totalorder %s3509_s1, %s3630_s29 }
 0xc94   : > { %p2835_p11 = scmp.lt.u32.totalorder %s2833_s3, %s2829_s5  ;;  %p2837_p13 = scmp.lt.u32.totalorder %s2829_s5, %s3509_s1 }
 0xc95   : > { %p2831_p7 = pnand %p2830_p6, %p3062_p4 }
 0xc96   : > { %p2836_p12 = por %p2835_p11, %p2834_p10 }
 0xc97   : > { %p2832_p9 = pneg %p2831_p7 }
 0xc98   : > { %p2838_p0 = por %p2837_p13, %p2836_p12 }
 0xc9a   : > { %p2839_p1 = pnand %p2838_p0, %p2832_p9 }
 0xc9c   : > { %2842 = shalt.err (!%p2839_p1)
}
 0xc9d   : > { %s2900_s7 = smov 256   ;;  %s2901_s2 = smov 16  }
 0xc9e   : > { %2613 = dma.vmem_to_hbm [thread:$0]  (%p3062_p4), %s3504_s22, 512, %s3509_s1, %s3511_s25, %s2900_s7, %s2900_s7, %s2901_s2  }
 0xc9f PF: > { %s3631_s24 = sld [smem:[#allocation9_spill]]  ;;  %s3632_s4 = sld [smem:[#allocation6_spill]] }
 0xca5   : > { %p2619_p2 = scmp.ge.s32.totalorder %s3631_s24, 2  ;;  %s2218_s27 = sand.u32 1, %s3632_s4  }
 0xca6   : > { %s2219_s5 = scalar_lea.sflag [#allocation4], %s2218_s27 }
 0xca7   : > { %p2616_p3 = pnand %p2619_p2, %p3069_p8 }
 0xca9   : > { %2868 = dma.done.wait (!%p2616_p3), %s2219_s5, 512  }
 0xcaa   : > { %2870 = vsyncadd (!%p2616_p3), %s2219_s5, 4294966784  ;;  %s36_s1 = sadd.s32 1, %s3631_s24   ;;  %s3634_s3 = sld [smem:[#allocation7_spill]] }
 0xcab   : > { %p33_p5 = scmp.ge.s32.totalorder %s36_s1, 4   ;;  %s3635_s24 = sld [smem:[#allocation13_spill]] }
 0xcac   : > { %s3636_s25 = sld [smem:[#allocation8_spill]]  ;;  %s3637_s5 = sld [smem:[#allocation10_spill]] }
 0xcad   : > { %s3638_s4 = smov %s2877_s30  ;;  %35 = sbr.rel (!%p33_p5) target bundleno = 15 (0xf), region = 157 }
 0xcb0   : > { %s3639_s30 = smov %s3634_s3 }
 0xcb4   :  { %2224 = vsyncpa [#allocation4], 1 }
 0xcb5   :  { %2226 = vsyncpa [#allocation4 + $0x1], 1 }

</bundles_post_ra>
